<compile_context>
chip_gen: v6e
topology: v6e:2x2x1
jax: 0.10.0
libtpu: 0.0.40
codegen_flags: <defaults>
</compile_context>

<pallas_src>
import jax
import jax.numpy as jnp
from jax.experimental import pallas as pl
from jax.experimental.pallas import tpu as pltpu


_VMEM_LIMIT_BYTES = 48 * 1024 * 1024  # fits v7x's 64 MiB physical VMEM with headroom


def _round_up(x, m):
    return (x + m - 1) // m * m


def _pick_row_tile(n_rows, max_tile):
    """Sublane (row) tile: as large as allowed, but aim for >=2 grid steps (v7x: 2 TCs)."""
    n8 = _round_up(max(int(n_rows), 1), 8)
    if n8 <= 8:
        return 8
    return max(8, min(int(max_tile), _round_up((n8 + 1) // 2, 8)))


def _sigmoid(z):
    return 1.0 / (1.0 + jnp.exp(-z))


# ---------------------------------------------------------------------------
# Fused 2-layer MLP:  y = ReLU(x @ W1 + b1) @ W2 + b2
# ---------------------------------------------------------------------------
def _mlp2_kernel(x_ref, w1_ref, b1_ref, w2_ref, b2_ref, o_ref):
    h = jnp.dot(x_ref[...], w1_ref[...], preferred_element_type=jnp.float32)
    h = jnp.maximum(h + b1_ref[...], 0.0)                               # bias + ReLU (VPU)
    y = jnp.dot(h, w2_ref[...], preferred_element_type=jnp.float32) + b2_ref[...]
    o_ref[...] = y.astype(o_ref.dtype)


def mlp_forward(x, w1, b1, w2, b2, *, block_b=512):
    """x: (N, d_in) f32. Weights stored (in_features, out_features); biases 1-D."""
    n, d_in = x.shape
    d_hid = w1.shape[1]
    d_out = w2.shape[1]
    d_in_p, d_hid_p, d_out_p = (_round_up(d, 128) for d in (d_in, d_hid, d_out))

    tile = _pick_row_tile(n, block_b)
    n_p = _round_up(n, tile)

    # Zero padding keeps the math exact and makes every block lane/sublane dense.
    x_p = jnp.pad(x, ((0, n_p - n), (0, d_in_p - d_in)))
    w1_p = jnp.pad(w1, ((0, d_in_p - d_in), (0, d_hid_p - d_hid)))
    b1_p = jnp.pad(b1.reshape(1, -1), ((0, 0), (0, d_hid_p - d_hid)))
    w2_p = jnp.pad(w2, ((0, d_hid_p - d_hid), (0, d_out_p - d_out)))
    b2_p = jnp.pad(b2.reshape(1, -1), ((0, 0), (0, d_out_p - d_out)))

    grid = (n_p // tile,)
    flops = 2 * n_p * (d_in_p * d_hid_p + d_hid_p * d_out_p)
    bytes_accessed = 4 * (n_p * d_in_p + d_in_p * d_hid_p + d_hid_p * d_out_p
                          + d_hid_p + d_out_p + n_p * d_out_p)

    out_p = pl.pallas_call(
        _mlp2_kernel,
        out_shape=jax.ShapeDtypeStruct((n_p, d_out_p), x.dtype),
        grid_spec=pltpu.PrefetchScalarGridSpec(
            num_scalar_prefetch=0,
            grid=grid,
            in_specs=[
                pl.BlockSpec((tile, d_in_p), lambda i: (i, 0)),      # x tile (pipelined)
                pl.BlockSpec((d_in_p, d_hid_p), lambda i: (0, 0)),   # W1 (grid-invariant)
                pl.BlockSpec((1, d_hid_p), lambda i: (0, 0)),        # b1
                pl.BlockSpec((d_hid_p, d_out_p), lambda i: (0, 0)),  # W2
                pl.BlockSpec((1, d_out_p), lambda i: (0, 0)),        # b2
            ],
            out_specs=pl.BlockSpec((tile, d_out_p), lambda i: (i, 0)),
        ),
        compiler_params=pltpu.CompilerParams(
            dimension_semantics=("parallel",),
            vmem_limit_bytes=_VMEM_LIMIT_BYTES,
        ),
        cost_estimate=pl.CostEstimate(
            flops=int(flops), transcendentals=0, bytes_accessed=int(bytes_accessed)),
    )(x_p, w1_p, b1_p, w2_p, b2_p)

    return out_p[:n, :d_out]


# ---------------------------------------------------------------------------
# Stacked 2-layer LSTM, emitting only the last timestep of the top layer.
# Grid = (batch tiles [parallel], time [arbitrary]); h/c live in VMEM scratch.
# All hidden/gate dims are padded per-gate to multiples of 128 (lane-dense).
# ---------------------------------------------------------------------------
def _lstm2_last_kernel(x_ref, wih0_ref, whh0_ref, b0_ref, wih1_ref, whh1_ref, b1_ref,
                       o_ref, h0_sc, c0_sc, h1_sc, c1_sc):
    t = pl.program_id(1)

    @pl.when(t == 0)
    def _():
        h0_sc[...] = jnp.zeros_like(h0_sc)
        c0_sc[...] = jnp.zeros_like(c0_sc)
        h1_sc[...] = jnp.zeros_like(h1_sc)
        c1_sc[...] = jnp.zeros_like(c1_sc)

    def cell(x_in, h, c, wih_ref, whh_ref, b_ref):
        hdim = h.shape[-1]                            # padded hidden (multiple of 128)
        z = (jnp.dot(x_in, wih_ref[...], preferred_element_type=jnp.float32)
             + jnp.dot(h, whh_ref[...], preferred_element_type=jnp.float32)
             + b_ref[...])
        # PyTorch gate order: i, f, g, o.  Each slice is a lane-aligned 128k chunk.
        i = _sigmoid(z[:, 0 * hdim:1 * hdim])
        f = _sigmoid(z[:, 1 * hdim:2 * hdim])
        g = jnp.tanh(z[:, 2 * hdim:3 * hdim])
        o = _sigmoid(z[:, 3 * hdim:4 * hdim])
        c_new = f * c + i * g
        h_new = o * jnp.tanh(c_new)
        return h_new, c_new

    x_t = x_ref[0]                                    # (tile_n, H_in_p) at this timestep
    h0, c0 = cell(x_t, h0_sc[...], c0_sc[...], wih0_ref, whh0_ref, b0_ref)
    h0_sc[...] = h0
    c0_sc[...] = c0
    h1, c1 = cell(h0, h1_sc[...], c1_sc[...], wih1_ref, whh1_ref, b1_ref)
    h1_sc[...] = h1
    c1_sc[...] = c1

    # Output block index depends only on the batch-tile axis -> stays resident in
    # VMEM; after the final timestep it holds h_{T-1} of the top layer.
    o_ref[...] = h1.astype(o_ref.dtype)


def _pad_lstm_layer(wih, whh, b, in_p, h_p):
    """Pad an LSTM layer's weights per-gate so each gate occupies h_p lanes."""
    in_dim = wih.shape[0]
    h = whh.shape[0]

    def pad_w(w, idim):
        w = w.reshape(idim, 4, h)
        w = jnp.pad(w, ((0, in_p if False else 0, ), (0, 0), (0, 0)))  # placeholder (unused)
        return w

    def pad_weight(w, idim, idim_p):
        w = w.reshape(idim, 4, h)
        w = jnp.pad(w, ((0, idim_p - idim), (0, 0), (0, h_p - h)))
        return w.reshape(idim_p, 4 * h_p)

    wih_p = pad_weight(wih, in_dim, in_p)
    whh_p = pad_weight(whh, h, h_p)
    b_p = jnp.pad(b.reshape(1, 4, h), ((0, 0), (0, 0), (0, h_p - h))).reshape(1, 4 * h_p)
    return wih_p, whh_p, b_p


def lstm2_last_forward(x_tm, lstm_params, *, block_n=256):
    """x_tm: (T, N, H_in) time-major. Returns top-layer hidden at the last step: (N, H)."""
    (wih0, whh0, b0), (wih1, whh1, b1) = lstm_params
    T, N, H_in = x_tm.shape
    H = whh0.shape[0]

    H_in_p = _round_up(H_in, 128)
    H_p = _round_up(H, 128)
    gate_p = 4 * H_p

    tile_n = _pick_row_tile(N, block_n)
    n_p = _round_up(N, tile_n)
    x_p = jnp.pad(x_tm, ((0, 0), (0, n_p - N), (0, H_in_p - H_in)))

    # Per-gate zero padding is exact: padded gate pre-activations are 0, so
    # i=f=o=0.5, g=0 there, giving c_pad = h_pad = 0 for every timestep.
    wih0_p, whh0_p, b0_p = _pad_lstm_layer(wih0, whh0, b0, H_in_p, H_p)
    wih1_p, whh1_p, b1_p = _pad_lstm_layer(wih1, whh1, b1, H_p, H_p)

    grid = (n_p // tile_n, T)
    flops = 2 * T * n_p * gate_p * (H_in_p + 3 * H_p)
    trans = 10 * T * n_p * H_p
    bytes_accessed = 4 * (T * n_p * H_in_p
                          + 2 * (H_in_p * gate_p + H_p * gate_p + gate_p)
                          + n_p * H_p)

    out = pl.pallas_call(
        _lstm2_last_kernel,
        out_shape=jax.ShapeDtypeStruct((n_p, H_p), x_tm.dtype),
        grid_spec=pltpu.PrefetchScalarGridSpec(
            num_scalar_prefetch=0,
            grid=grid,
            in_specs=[
                pl.BlockSpec((1, tile_n, H_in_p), lambda n, t: (t, n, 0)),  # x_t tile
                pl.BlockSpec((H_in_p, gate_p), lambda n, t: (0, 0)),        # layer-0 W_ih
                pl.BlockSpec((H_p, gate_p), lambda n, t: (0, 0)),           # layer-0 W_hh
                pl.BlockSpec((1, gate_p), lambda n, t: (0, 0)),             # layer-0 bias
                pl.BlockSpec((H_p, gate_p), lambda n, t: (0, 0)),           # layer-1 W_ih
                pl.BlockSpec((H_p, gate_p), lambda n, t: (0, 0)),           # layer-1 W_hh
                pl.BlockSpec((1, gate_p), lambda n, t: (0, 0)),             # layer-1 bias
            ],
            out_specs=pl.BlockSpec((tile_n, H_p), lambda n, t: (n, 0)),
            scratch_shapes=[pltpu.VMEM((tile_n, H_p), jnp.float32)] * 4,    # h0,c0,h1,c1
        ),
        compiler_params=pltpu.CompilerParams(
            dimension_semantics=("parallel", "arbitrary"),
            vmem_limit_bytes=_VMEM_LIMIT_BYTES,
        ),
        cost_estimate=pl.CostEstimate(
            flops=int(flops), transcendentals=int(trans), bytes_accessed=int(bytes_accessed)),
    )(x_p, wih0_p, whh0_p, b0_p, wih1_p, whh1_p, b1_p)

    return out[:N, :H]


# ---------------------------------------------------------------------------
# Full DE forward
# ---------------------------------------------------------------------------
@jax.jit
def de_forward(tokens, de, params):
    """DE.forward: (token ids (B,S,L) int32, de (B,S,L) f32) -> (B, 3)."""
    # TODO(synk): embedding gather, concat, reshapes/transpose and the length-S sum are
    # trivial data movement; left to XLA rather than hand-written Pallas.
    emb = jnp.take(params["embedding"], tokens, axis=0)            # (B,S,L,E)
    x = jnp.concatenate([emb, de[..., None]], axis=-1)             # (B,S,L,E+1)
    B, S, L, D = x.shape
    H = params["lstm"][0][1].shape[0]

    flat = x.reshape(B * S * L, D)
    enc = mlp_forward(flat, *params["enc"])                        # Enc MLP: (B*S*L, H)
    seq_tm = enc.reshape(B * S, L, H).transpose(1, 0, 2)           # time-major (L, B*S, H)
    last = lstm2_last_forward(seq_tm, params["lstm"])              # (B*S, H)
    y = last.reshape(B, S, H).sum(axis=1)                          # (B, H)
    return mlp_forward(y, *params["cls"])                          # cls MLP: (B, 3)


# ---------------------------------------------------------------------------
# Pure-JAX reference (same math, no Pallas)
# ---------------------------------------------------------------------------
def _mlp_reference(x, w1, b1, w2, b2):
    h = jnp.maximum(x @ w1 + b1, 0.0)
    return h @ w2 + b2


def _lstm2_last_reference(x, lstm_params):
    N, T, _ = x.shape
    layer_in = x
    for (wih, whh, b) in lstm_params:
        H = whh.shape[0]
        h = jnp.zeros((N, H), jnp.float32)
        c = jnp.zeros((N, H), jnp.float32)
        outs = []
        for t in range(T):
            z = layer_in[:, t, :] @ wih + h @ whh + b
            i = _sigmoid(z[:, 0:H])
            f = _sigmoid(z[:, H:2 * H])
            g = jnp.tanh(z[:, 2 * H:3 * H])
            o = _sigmoid(z[:, 3 * H:4 * H])
            c = f * c + i * g
            h = o * jnp.tanh(c)
            outs.append(h)
        layer_in = jnp.stack(outs, axis=1)
    return layer_in[:, -1, :]


def de_reference(tokens, de, params):
    emb = jnp.take(params["embedding"], tokens, axis=0)
    x = jnp.concatenate([emb, de[..., None]], axis=-1)
    B, S, L, D = x.shape
    x = x.reshape(B * S, L, D)
    enc = _mlp_reference(x, *params["enc"])
    last = _lstm2_last_reference(enc, params["lstm"])
    y = last.reshape(B, S, -1).sum(axis=1)
    return _mlp_reference(y, *params["cls"])


# ---------------------------------------------------------------------------
# Deterministic PyTorch-style parameter init
# ---------------------------------------------------------------------------
def init_de_params(key, vocab_size, embed_dim, hidden_dim):
    input_dim = embed_dim + 1
    keys = jax.random.split(key, 16)

    def uniform(k, shape, fan_in):
        s = 1.0 / jnp.sqrt(fan_in)
        return jax.random.uniform(k, shape, jnp.float32, -s, s)

    embedding = jax.random.normal(keys[0], (vocab_size, embed_dim), jnp.float32)

    # Enc: MLP(input_dim -> 50 -> hidden_dim); weights stored (in, out) = torch W.T
    enc = (uniform(keys[1], (input_dim, 50), input_dim),
           uniform(keys[2], (50,), input_dim),
           uniform(keys[3], (50, hidden_dim), 50),
           uniform(keys[4], (hidden_dim,), 50))

    # cls: MLP(hidden_dim -> 30 -> 3)
    cls = (uniform(keys[5], (hidden_dim, 30), hidden_dim),
           uniform(keys[6], (30,), hidden_dim),
           uniform(keys[7], (30, 3), 30),
           uniform(keys[8], (3,), 30))

    # 2-layer LSTM (input size == hidden size == hidden_dim). Weights stored
    # transposed vs torch: (in, 4H); gate order [i, f, g, o]; b_ih/b_hh combined.
    def lstm_layer(k0, k1, k2, in_dim):
        return (uniform(k0, (in_dim, 4 * hidden_dim), hidden_dim),
                uniform(k1, (hidden_dim, 4 * hidden_dim), hidden_dim),
                uniform(k2, (1, 4 * hidden_dim), hidden_dim))

    lstm = [lstm_layer(keys[9], keys[10], keys[11], hidden_dim),
            lstm_layer(keys[12], keys[13], keys[14], hidden_dim)]

    return {"embedding": embedding, "enc": enc, "cls": cls, "lstm": lstm}


if __name__ == "__main__":
    key = jax.random.PRNGKey(0)
    k_tok, k_de, k_param = jax.random.split(key, 3)

    batch, seq_size, seq_length = 2, 3, 8
    vocab_size, embed_dim, hidden_dim = 20, 16, 32

    params = init_de_params(k_param, vocab_size, embed_dim, hidden_dim)
    tokens = jax.random.randint(k_tok, (batch, seq_size, seq_length), 0, vocab_size,
                                dtype=jnp.int32)
    de = jax.random.normal(k_de, (batch, seq_size, seq_length), jnp.float32)

    out = de_forward(tokens, de, params)
    out = jax.block_until_ready(out)

    ref = de_reference(tokens, de, params)
    assert out.shape == (batch, 3)
    assert jnp.allclose(out, ref, atol=5e-3, rtol=5e-3), (
        "mismatch vs reference: max abs err "
        f"{jnp.max(jnp.abs(out - ref))}")

    print("KERNEL_OK")
</pallas_src>

<mosaic_0001>
module attributes {stable_mosaic.version = 11 : i64} {
  func.func @_lstm2_last_kernel(%arg0: i32, %arg1: i32, %arg2: memref<1x8x128xf32, #tpu.memory_space<vmem>>, %arg3: memref<128x512xf32, #tpu.memory_space<vmem>>, %arg4: memref<128x512xf32, #tpu.memory_space<vmem>>, %arg5: memref<1x512xf32, #tpu.memory_space<vmem>>, %arg6: memref<128x512xf32, #tpu.memory_space<vmem>>, %arg7: memref<128x512xf32, #tpu.memory_space<vmem>>, %arg8: memref<1x512xf32, #tpu.memory_space<vmem>>, %arg9: memref<8x128xf32, #tpu.memory_space<vmem>>, %arg10: memref<8x128xf32, #tpu.memory_space<vmem>>, %arg11: memref<8x128xf32, #tpu.memory_space<vmem>>, %arg12: memref<8x128xf32, #tpu.memory_space<vmem>>, %arg13: memref<8x128xf32, #tpu.memory_space<vmem>>) attributes {dimension_semantics = [#tpu.dimension_semantics<parallel>, #tpu.dimension_semantics<arbitrary>], iteration_bounds = array<i64: 1, 8>, scalar_prefetch = 0 : i64, scratch_operands = 4 : i64, tpu.core_type = #tpu.core_type<tc>, window_params = [{transform_indices = @transform_0, window_bounds = array<i64: 1, 8, 128>}, {pipeline_mode = #tpu.pipeline_mode<synchronous>, transform_indices = @transform_1, window_bounds = array<i64: 128, 512>}, {pipeline_mode = #tpu.pipeline_mode<synchronous>, transform_indices = @transform_2, window_bounds = array<i64: 128, 512>}, {pipeline_mode = #tpu.pipeline_mode<synchronous>, transform_indices = @transform_3, window_bounds = array<i64: 1, 512>}, {pipeline_mode = #tpu.pipeline_mode<synchronous>, transform_indices = @transform_4, window_bounds = array<i64: 128, 512>}, {pipeline_mode = #tpu.pipeline_mode<synchronous>, transform_indices = @transform_5, window_bounds = array<i64: 128, 512>}, {pipeline_mode = #tpu.pipeline_mode<synchronous>, transform_indices = @transform_6, window_bounds = array<i64: 1, 512>}, {transform_indices = @transform_7, window_bounds = array<i64: 8, 128>}]} {
    %c0_i32 = arith.constant 0 : i32
    %0 = arith.cmpi eq, %arg1, %c0_i32 : i32
    %1 = arith.extui %0 : i1 to i32
    %c0_i32_0 = arith.constant 0 : i32
    %2 = arith.cmpi ne, %1, %c0_i32_0 : i32
    scf.if %2 {
      %cst_54 = arith.constant 0.000000e+00 : f32
      %92 = vector.broadcast %cst_54 : f32 to vector<8x128xf32>
      %c0_55 = arith.constant 0 : index
      %c0_56 = arith.constant 0 : index
      %93 = vector.load %arg10[%c0_55, %c0_56] : memref<8x128xf32, #tpu.memory_space<vmem>>, vector<8x128xf32>
      tpu.vector_store %arg10[%c0_55, %c0_56], %92 {strides = array<i32>} : memref<8x128xf32, #tpu.memory_space<vmem>>, vector<8x128xf32>,
      %cst_57 = arith.constant 0.000000e+00 : f32
      %94 = vector.broadcast %cst_57 : f32 to vector<8x128xf32>
      %c0_58 = arith.constant 0 : index
      %c0_59 = arith.constant 0 : index
      %95 = vector.load %arg11[%c0_58, %c0_59] : memref<8x128xf32, #tpu.memory_space<vmem>>, vector<8x128xf32>
      tpu.vector_store %arg11[%c0_58, %c0_59], %94 {strides = array<i32>} : memref<8x128xf32, #tpu.memory_space<vmem>>, vector<8x128xf32>,
      %cst_60 = arith.constant 0.000000e+00 : f32
      %96 = vector.broadcast %cst_60 : f32 to vector<8x128xf32>
      %c0_61 = arith.constant 0 : index
      %c0_62 = arith.constant 0 : index
      %97 = vector.load %arg12[%c0_61, %c0_62] : memref<8x128xf32, #tpu.memory_space<vmem>>, vector<8x128xf32>
      tpu.vector_store %arg12[%c0_61, %c0_62], %96 {strides = array<i32>} : memref<8x128xf32, #tpu.memory_space<vmem>>, vector<8x128xf32>,
      %cst_63 = arith.constant 0.000000e+00 : f32
      %98 = vector.broadcast %cst_63 : f32 to vector<8x128xf32>
      %c0_64 = arith.constant 0 : index
      %c0_65 = arith.constant 0 : index
      %99 = vector.load %arg13[%c0_64, %c0_65] : memref<8x128xf32, #tpu.memory_space<vmem>>, vector<8x128xf32>
      tpu.vector_store %arg13[%c0_64, %c0_65], %98 {strides = array<i32>} : memref<8x128xf32, #tpu.memory_space<vmem>>, vector<8x128xf32>,
    } else {
    }
    %c0 = arith.constant 0 : index
    %c0_1 = arith.constant 0 : index
    %c0_2 = arith.constant 0 : index
    %3 = vector.load %arg2[%c0, %c0_1, %c0_2] : memref<1x8x128xf32, #tpu.memory_space<vmem>>, vector<1x8x128xf32>
    %4 = vector.shape_cast %3 : vector<1x8x128xf32> to vector<8x128xf32>
    %c0_3 = arith.constant 0 : index
    %c0_4 = arith.constant 0 : index
    %5 = vector.load %arg10[%c0_3, %c0_4] : memref<8x128xf32, #tpu.memory_space<vmem>>, vector<8x128xf32>
    %c0_5 = arith.constant 0 : index
    %c0_6 = arith.constant 0 : index
    %6 = vector.load %arg11[%c0_5, %c0_6] : memref<8x128xf32, #tpu.memory_space<vmem>>, vector<8x128xf32>
    %c0_7 = arith.constant 0 : index
    %c0_8 = arith.constant 0 : index
    %7 = vector.load %arg3[%c0_7, %c0_8] : memref<128x512xf32, #tpu.memory_space<vmem>>, vector<128x512xf32>
    %cst = arith.constant dense<0.000000e+00> : vector<8x512xf32>
    %8 = tpu.matmul %4, %7, %cst {dimension_numbers = #tpu.dot_dimension_numbers<[1], [0], [0], [1], [0, 0, 1, 1], [], []>} : vector<8x128xf32>, vector<128x512xf32>, vector<8x512xf32> -> vector<8x512xf32>
    %c0_9 = arith.constant 0 : index
    %c0_10 = arith.constant 0 : index
    %9 = vector.load %arg4[%c0_9, %c0_10] : memref<128x512xf32, #tpu.memory_space<vmem>>, vector<128x512xf32>
    %cst_11 = arith.constant dense<0.000000e+00> : vector<8x512xf32>
    %10 = tpu.matmul %5, %9, %cst_11 {dimension_numbers = #tpu.dot_dimension_numbers<[1], [0], [0], [1], [0, 0, 1, 1], [], []>} : vector<8x128xf32>, vector<128x512xf32>, vector<8x512xf32> -> vector<8x512xf32>
    %11 = arith.addf %8, %10 : vector<8x512xf32>
    %c0_12 = arith.constant 0 : index
    %c0_13 = arith.constant 0 : index
    %12 = vector.load %arg5[%c0_12, %c0_13] : memref<1x512xf32, #tpu.memory_space<vmem>>, vector<1x512xf32>
    %13 = vector.broadcast %12 : vector<1x512xf32> to vector<8x512xf32>
    %14 = arith.addf %11, %13 : vector<8x512xf32>
    %15 = vector.extract_strided_slice %14 {offsets = [0, 0], sizes = [8, 128], strides = [1, 1]} : vector<8x512xf32> to vector<8x128xf32>
    %cst_14 = arith.constant 0.000000e+00 : f32
    %16 = vector.broadcast %cst_14 : f32 to vector<8x128xf32>
    %17 = arith.subf %16, %15 : vector<8x128xf32>
    %18 = math.exp %17 : vector<8x128xf32>
    %cst_15 = arith.constant 1.000000e+00 : f32
    %19 = vector.broadcast %cst_15 : f32 to vector<8x128xf32>
    %20 = arith.addf %19, %18 : vector<8x128xf32>
    %cst_16 = arith.constant 1.000000e+00 : f32
    %21 = vector.broadcast %cst_16 : f32 to vector<8x128xf32>
    %22 = arith.divf %21, %20 : vector<8x128xf32>
    %23 = vector.extract_strided_slice %14 {offsets = [0, 128], sizes = [8, 128], strides = [1, 1]} : vector<8x512xf32> to vector<8x128xf32>
    %cst_17 = arith.constant 0.000000e+00 : f32
    %24 = vector.broadcast %cst_17 : f32 to vector<8x128xf32>
    %25 = arith.subf %24, %23 : vector<8x128xf32>
    %26 = math.exp %25 : vector<8x128xf32>
    %cst_18 = arith.constant 1.000000e+00 : f32
    %27 = vector.broadcast %cst_18 : f32 to vector<8x128xf32>
    %28 = arith.addf %27, %26 : vector<8x128xf32>
    %cst_19 = arith.constant 1.000000e+00 : f32
    %29 = vector.broadcast %cst_19 : f32 to vector<8x128xf32>
    %30 = arith.divf %29, %28 : vector<8x128xf32>
    %31 = vector.extract_strided_slice %14 {offsets = [0, 256], sizes = [8, 128], strides = [1, 1]} : vector<8x512xf32> to vector<8x128xf32>
    %32 = math.tanh %31 : vector<8x128xf32>
    %33 = vector.extract_strided_slice %14 {offsets = [0, 384], sizes = [8, 128], strides = [1, 1]} : vector<8x512xf32> to vector<8x128xf32>
    %cst_20 = arith.constant 0.000000e+00 : f32
    %34 = vector.broadcast %cst_20 : f32 to vector<8x128xf32>
    %35 = arith.subf %34, %33 : vector<8x128xf32>
    %36 = math.exp %35 : vector<8x128xf32>
    %cst_21 = arith.constant 1.000000e+00 : f32
    %37 = vector.broadcast %cst_21 : f32 to vector<8x128xf32>
    %38 = arith.addf %37, %36 : vector<8x128xf32>
    %cst_22 = arith.constant 1.000000e+00 : f32
    %39 = vector.broadcast %cst_22 : f32 to vector<8x128xf32>
    %40 = arith.divf %39, %38 : vector<8x128xf32>
    %41 = arith.mulf %30, %6 : vector<8x128xf32>
    %42 = arith.mulf %22, %32 : vector<8x128xf32>
    %43 = arith.addf %41, %42 : vector<8x128xf32>
    %44 = math.tanh %43 : vector<8x128xf32>
    %45 = arith.mulf %40, %44 : vector<8x128xf32>
    %c0_23 = arith.constant 0 : index
    %c0_24 = arith.constant 0 : index
    %46 = vector.load %arg10[%c0_23, %c0_24] : memref<8x128xf32, #tpu.memory_space<vmem>>, vector<8x128xf32>
    tpu.vector_store %arg10[%c0_23, %c0_24], %45 {strides = array<i32>} : memref<8x128xf32, #tpu.memory_space<vmem>>, vector<8x128xf32>,
    %c0_25 = arith.constant 0 : index
    %c0_26 = arith.constant 0 : index
    %47 = vector.load %arg11[%c0_25, %c0_26] : memref<8x128xf32, #tpu.memory_space<vmem>>, vector<8x128xf32>
    tpu.vector_store %arg11[%c0_25, %c0_26], %43 {strides = array<i32>} : memref<8x128xf32, #tpu.memory_space<vmem>>, vector<8x128xf32>,
    %c0_27 = arith.constant 0 : index
    %c0_28 = arith.constant 0 : index
    %48 = vector.load %arg12[%c0_27, %c0_28] : memref<8x128xf32, #tpu.memory_space<vmem>>, vector<8x128xf32>
    %c0_29 = arith.constant 0 : index
    %c0_30 = arith.constant 0 : index
    %49 = vector.load %arg13[%c0_29, %c0_30] : memref<8x128xf32, #tpu.memory_space<vmem>>, vector<8x128xf32>
    %c0_31 = arith.constant 0 : index
    %c0_32 = arith.constant 0 : index
    %50 = vector.load %arg6[%c0_31, %c0_32] : memref<128x512xf32, #tpu.memory_space<vmem>>, vector<128x512xf32>
    %cst_33 = arith.constant dense<0.000000e+00> : vector<8x512xf32>
    %51 = tpu.matmul %45, %50, %cst_33 {dimension_numbers = #tpu.dot_dimension_numbers<[1], [0], [0], [1], [0, 0, 1, 1], [], []>} : vector<8x128xf32>, vector<128x512xf32>, vector<8x512xf32> -> vector<8x512xf32>
    %c0_34 = arith.constant 0 : index
    %c0_35 = arith.constant 0 : index
    %52 = vector.load %arg7[%c0_34, %c0_35] : memref<128x512xf32, #tpu.memory_space<vmem>>, vector<128x512xf32>
    %cst_36 = arith.constant dense<0.000000e+00> : vector<8x512xf32>
    %53 = tpu.matmul %48, %52, %cst_36 {dimension_numbers = #tpu.dot_dimension_numbers<[1], [0], [0], [1], [0, 0, 1, 1], [], []>} : vector<8x128xf32>, vector<128x512xf32>, vector<8x512xf32> -> vector<8x512xf32>
    %54 = arith.addf %51, %53 : vector<8x512xf32>
    %c0_37 = arith.constant 0 : index
    %c0_38 = arith.constant 0 : index
    %55 = vector.load %arg8[%c0_37, %c0_38] : memref<1x512xf32, #tpu.memory_space<vmem>>, vector<1x512xf32>
    %56 = vector.broadcast %55 : vector<1x512xf32> to vector<8x512xf32>
    %57 = arith.addf %54, %56 : vector<8x512xf32>
    %58 = vector.extract_strided_slice %57 {offsets = [0, 0], sizes = [8, 128], strides = [1, 1]} : vector<8x512xf32> to vector<8x128xf32>
    %cst_39 = arith.constant 0.000000e+00 : f32
    %59 = vector.broadcast %cst_39 : f32 to vector<8x128xf32>
    %60 = arith.subf %59, %58 : vector<8x128xf32>
    %61 = math.exp %60 : vector<8x128xf32>
    %cst_40 = arith.constant 1.000000e+00 : f32
    %62 = vector.broadcast %cst_40 : f32 to vector<8x128xf32>
    %63 = arith.addf %62, %61 : vector<8x128xf32>
    %cst_41 = arith.constant 1.000000e+00 : f32
    %64 = vector.broadcast %cst_41 : f32 to vector<8x128xf32>
    %65 = arith.divf %64, %63 : vector<8x128xf32>
    %66 = vector.extract_strided_slice %57 {offsets = [0, 128], sizes = [8, 128], strides = [1, 1]} : vector<8x512xf32> to vector<8x128xf32>
    %cst_42 = arith.constant 0.000000e+00 : f32
    %67 = vector.broadcast %cst_42 : f32 to vector<8x128xf32>
    %68 = arith.subf %67, %66 : vector<8x128xf32>
    %69 = math.exp %68 : vector<8x128xf32>
    %cst_43 = arith.constant 1.000000e+00 : f32
    %70 = vector.broadcast %cst_43 : f32 to vector<8x128xf32>
    %71 = arith.addf %70, %69 : vector<8x128xf32>
    %cst_44 = arith.constant 1.000000e+00 : f32
    %72 = vector.broadcast %cst_44 : f32 to vector<8x128xf32>
    %73 = arith.divf %72, %71 : vector<8x128xf32>
    %74 = vector.extract_strided_slice %57 {offsets = [0, 256], sizes = [8, 128], strides = [1, 1]} : vector<8x512xf32> to vector<8x128xf32>
    %75 = math.tanh %74 : vector<8x128xf32>
    %76 = vector.extract_strided_slice %57 {offsets = [0, 384], sizes = [8, 128], strides = [1, 1]} : vector<8x512xf32> to vector<8x128xf32>
    %cst_45 = arith.constant 0.000000e+00 : f32
    %77 = vector.broadcast %cst_45 : f32 to vector<8x128xf32>
    %78 = arith.subf %77, %76 : vector<8x128xf32>
    %79 = math.exp %78 : vector<8x128xf32>
    %cst_46 = arith.constant 1.000000e+00 : f32
    %80 = vector.broadcast %cst_46 : f32 to vector<8x128xf32>
    %81 = arith.addf %80, %79 : vector<8x128xf32>
    %cst_47 = arith.constant 1.000000e+00 : f32
    %82 = vector.broadcast %cst_47 : f32 to vector<8x128xf32>
    %83 = arith.divf %82, %81 : vector<8x128xf32>
    %84 = arith.mulf %73, %49 : vector<8x128xf32>
    %85 = arith.mulf %65, %75 : vector<8x128xf32>
    %86 = arith.addf %84, %85 : vector<8x128xf32>
    %87 = math.tanh %86 : vector<8x128xf32>
    %88 = arith.mulf %83, %87 : vector<8x128xf32>
    %c0_48 = arith.constant 0 : index
    %c0_49 = arith.constant 0 : index
    %89 = vector.load %arg12[%c0_48, %c0_49] : memref<8x128xf32, #tpu.memory_space<vmem>>, vector<8x128xf32>
    tpu.vector_store %arg12[%c0_48, %c0_49], %88 {strides = array<i32>} : memref<8x128xf32, #tpu.memory_space<vmem>>, vector<8x128xf32>,
    %c0_50 = arith.constant 0 : index
    %c0_51 = arith.constant 0 : index
    %90 = vector.load %arg13[%c0_50, %c0_51] : memref<8x128xf32, #tpu.memory_space<vmem>>, vector<8x128xf32>
    tpu.vector_store %arg13[%c0_50, %c0_51], %86 {strides = array<i32>} : memref<8x128xf32, #tpu.memory_space<vmem>>, vector<8x128xf32>,
    %c0_52 = arith.constant 0 : index
    %c0_53 = arith.constant 0 : index
    %91 = vector.load %arg9[%c0_52, %c0_53] : memref<8x128xf32, #tpu.memory_space<vmem>>, vector<8x128xf32>
    tpu.vector_store %arg9[%c0_52, %c0_53], %88 {strides = array<i32>} : memref<8x128xf32, #tpu.memory_space<vmem>>, vector<8x128xf32>,
    return
  }
  func.func @transform_0(%arg0: i32, %arg1: i32) -> (i32, i32, i32) {
    %c0_i32 = arith.constant 0 : i32
    %c0_i32_0 = arith.constant 0 : i32
    return %arg1, %arg0, %c0_i32 : i32, i32, i32
  }
  func.func @transform_1(%arg0: i32, %arg1: i32) -> (i32, i32) {
    %c0_i32 = arith.constant 0 : i32
    %c0_i32_0 = arith.constant 0 : i32
    %c0_i32_1 = arith.constant 0 : i32
    return %c0_i32, %c0_i32_0 : i32, i32
  }
  func.func @transform_2(%arg0: i32, %arg1: i32) -> (i32, i32) {
    %c0_i32 = arith.constant 0 : i32
    %c0_i32_0 = arith.constant 0 : i32
    %c0_i32_1 = arith.constant 0 : i32
    return %c0_i32, %c0_i32_0 : i32, i32
  }
  func.func @transform_3(%arg0: i32, %arg1: i32) -> (i32, i32) {
    %c0_i32 = arith.constant 0 : i32
    %c0_i32_0 = arith.constant 0 : i32
    %c0_i32_1 = arith.constant 0 : i32
    return %c0_i32, %c0_i32_0 : i32, i32
  }
  func.func @transform_4(%arg0: i32, %arg1: i32) -> (i32, i32) {
    %c0_i32 = arith.constant 0 : i32
    %c0_i32_0 = arith.constant 0 : i32
    %c0_i32_1 = arith.constant 0 : i32
    return %c0_i32, %c0_i32_0 : i32, i32
  }
  func.func @transform_5(%arg0: i32, %arg1: i32) -> (i32, i32) {
    %c0_i32 = arith.constant 0 : i32
    %c0_i32_0 = arith.constant 0 : i32
    %c0_i32_1 = arith.constant 0 : i32
    return %c0_i32, %c0_i32_0 : i32, i32
  }
  func.func @transform_6(%arg0: i32, %arg1: i32) -> (i32, i32) {
    %c0_i32 = arith.constant 0 : i32
    %c0_i32_0 = arith.constant 0 : i32
    %c0_i32_1 = arith.constant 0 : i32
    return %c0_i32, %c0_i32_0 : i32, i32
  }
  func.func @transform_7(%arg0: i32, %arg1: i32) -> (i32, i32) {
    %c0_i32 = arith.constant 0 : i32
    %c0_i32_0 = arith.constant 0 : i32
    return %arg0, %c0_i32 : i32, i32
  }
}

module attributes {stable_mosaic.version = 11 : i64} {
  func.func @_mlp2_kernel(%arg0: i32, %arg1: memref<24x128xf32, #tpu.memory_space<vmem>>, %arg2: memref<128x128xf32, #tpu.memory_space<vmem>>, %arg3: memref<1x128xf32, #tpu.memory_space<vmem>>, %arg4: memref<128x128xf32, #tpu.memory_space<vmem>>, %arg5: memref<1x128xf32, #tpu.memory_space<vmem>>, %arg6: memref<24x128xf32, #tpu.memory_space<vmem>>) attributes {dimension_semantics = [#tpu.dimension_semantics<parallel>], iteration_bounds = array<i64: 2>, scalar_prefetch = 0 : i64, scratch_operands = 0 : i64, tpu.core_type = #tpu.core_type<tc>, window_params = [{transform_indices = @transform_0, window_bounds = array<i64: 24, 128>}, {pipeline_mode = #tpu.pipeline_mode<synchronous>, transform_indices = @transform_1, window_bounds = array<i64: 128, 128>}, {pipeline_mode = #tpu.pipeline_mode<synchronous>, transform_indices = @transform_2, window_bounds = array<i64: 1, 128>}, {pipeline_mode = #tpu.pipeline_mode<synchronous>, transform_indices = @transform_3, window_bounds = array<i64: 128, 128>}, {pipeline_mode = #tpu.pipeline_mode<synchronous>, transform_indices = @transform_4, window_bounds = array<i64: 1, 128>}, {transform_indices = @transform_5, window_bounds = array<i64: 24, 128>}]} {
    %c0 = arith.constant 0 : index
    %c0_0 = arith.constant 0 : index
    %0 = vector.load %arg1[%c0, %c0_0] : memref<24x128xf32, #tpu.memory_space<vmem>>, vector<24x128xf32>
    %c0_1 = arith.constant 0 : index
    %c0_2 = arith.constant 0 : index
    %1 = vector.load %arg2[%c0_1, %c0_2] : memref<128x128xf32, #tpu.memory_space<vmem>>, vector<128x128xf32>
    %cst = arith.constant dense<0.000000e+00> : vector<24x128xf32>
    %2 = tpu.matmul %0, %1, %cst {dimension_numbers = #tpu.dot_dimension_numbers<[1], [0], [0], [1], [0, 0, 1, 1], [], []>} : vector<24x128xf32>, vector<128x128xf32>, vector<24x128xf32> -> vector<24x128xf32>
    %c0_3 = arith.constant 0 : index
    %c0_4 = arith.constant 0 : index
    %3 = vector.load %arg3[%c0_3, %c0_4] : memref<1x128xf32, #tpu.memory_space<vmem>>, vector<1x128xf32>
    %4 = vector.broadcast %3 : vector<1x128xf32> to vector<24x128xf32>
    %5 = arith.addf %2, %4 : vector<24x128xf32>
    %cst_5 = arith.constant 0.000000e+00 : f32
    %6 = vector.broadcast %cst_5 : f32 to vector<24x128xf32>
    %7 = arith.maximumf %5, %6 : vector<24x128xf32>
    %c0_6 = arith.constant 0 : index
    %c0_7 = arith.constant 0 : index
    %8 = vector.load %arg4[%c0_6, %c0_7] : memref<128x128xf32, #tpu.memory_space<vmem>>, vector<128x128xf32>
    %cst_8 = arith.constant dense<0.000000e+00> : vector<24x128xf32>
    %9 = tpu.matmul %7, %8, %cst_8 {dimension_numbers = #tpu.dot_dimension_numbers<[1], [0], [0], [1], [0, 0, 1, 1], [], []>} : vector<24x128xf32>, vector<128x128xf32>, vector<24x128xf32> -> vector<24x128xf32>
    %c0_9 = arith.constant 0 : index
    %c0_10 = arith.constant 0 : index
    %10 = vector.load %arg5[%c0_9, %c0_10] : memref<1x128xf32, #tpu.memory_space<vmem>>, vector<1x128xf32>
    %11 = vector.broadcast %10 : vector<1x128xf32> to vector<24x128xf32>
    %12 = arith.addf %9, %11 : vector<24x128xf32>
    %c0_11 = arith.constant 0 : index
    %c0_12 = arith.constant 0 : index
    %13 = vector.load %arg6[%c0_11, %c0_12] : memref<24x128xf32, #tpu.memory_space<vmem>>, vector<24x128xf32>
    tpu.vector_store %arg6[%c0_11, %c0_12], %12 {strides = array<i32>} : memref<24x128xf32, #tpu.memory_space<vmem>>, vector<24x128xf32>,
    return
  }
  func.func @transform_0(%arg0: i32) -> (i32, i32) {
    %c0_i32 = arith.constant 0 : i32
    %c0_i32_0 = arith.constant 0 : i32
    return %arg0, %c0_i32 : i32, i32
  }
  func.func @transform_1(%arg0: i32) -> (i32, i32) {
    %c0_i32 = arith.constant 0 : i32
    %c0_i32_0 = arith.constant 0 : i32
    %c0_i32_1 = arith.constant 0 : i32
    return %c0_i32, %c0_i32_0 : i32, i32
  }
  func.func @transform_2(%arg0: i32) -> (i32, i32) {
    %c0_i32 = arith.constant 0 : i32
    %c0_i32_0 = arith.constant 0 : i32
    %c0_i32_1 = arith.constant 0 : i32
    return %c0_i32, %c0_i32_0 : i32, i32
  }
  func.func @transform_3(%arg0: i32) -> (i32, i32) {
    %c0_i32 = arith.constant 0 : i32
    %c0_i32_0 = arith.constant 0 : i32
    %c0_i32_1 = arith.constant 0 : i32
    return %c0_i32, %c0_i32_0 : i32, i32
  }
  func.func @transform_4(%arg0: i32) -> (i32, i32) {
    %c0_i32 = arith.constant 0 : i32
    %c0_i32_0 = arith.constant 0 : i32
    %c0_i32_1 = arith.constant 0 : i32
    return %c0_i32, %c0_i32_0 : i32, i32
  }
  func.func @transform_5(%arg0: i32) -> (i32, i32) {
    %c0_i32 = arith.constant 0 : i32
    %c0_i32_0 = arith.constant 0 : i32
    return %arg0, %c0_i32 : i32, i32
  }
}

module attributes {stable_mosaic.version = 11 : i64} {
  func.func @_mlp2_kernel(%arg0: i32, %arg1: memref<8x128xf32, #tpu.memory_space<vmem>>, %arg2: memref<128x128xf32, #tpu.memory_space<vmem>>, %arg3: memref<1x128xf32, #tpu.memory_space<vmem>>, %arg4: memref<128x128xf32, #tpu.memory_space<vmem>>, %arg5: memref<1x128xf32, #tpu.memory_space<vmem>>, %arg6: memref<8x128xf32, #tpu.memory_space<vmem>>) attributes {dimension_semantics = [#tpu.dimension_semantics<parallel>], iteration_bounds = array<i64: 1>, scalar_prefetch = 0 : i64, scratch_operands = 0 : i64, tpu.core_type = #tpu.core_type<tc>, window_params = [{transform_indices = @transform_0, window_bounds = array<i64: 8, 128>}, {pipeline_mode = #tpu.pipeline_mode<synchronous>, transform_indices = @transform_1, window_bounds = array<i64: 128, 128>}, {pipeline_mode = #tpu.pipeline_mode<synchronous>, transform_indices = @transform_2, window_bounds = array<i64: 1, 128>}, {pipeline_mode = #tpu.pipeline_mode<synchronous>, transform_indices = @transform_3, window_bounds = array<i64: 128, 128>}, {pipeline_mode = #tpu.pipeline_mode<synchronous>, transform_indices = @transform_4, window_bounds = array<i64: 1, 128>}, {transform_indices = @transform_5, window_bounds = array<i64: 8, 128>}]} {
    %c0 = arith.constant 0 : index
    %c0_0 = arith.constant 0 : index
    %0 = vector.load %arg1[%c0, %c0_0] : memref<8x128xf32, #tpu.memory_space<vmem>>, vector<8x128xf32>
    %c0_1 = arith.constant 0 : index
    %c0_2 = arith.constant 0 : index
    %1 = vector.load %arg2[%c0_1, %c0_2] : memref<128x128xf32, #tpu.memory_space<vmem>>, vector<128x128xf32>
    %cst = arith.constant dense<0.000000e+00> : vector<8x128xf32>
    %2 = tpu.matmul %0, %1, %cst {dimension_numbers = #tpu.dot_dimension_numbers<[1], [0], [0], [1], [0, 0, 1, 1], [], []>} : vector<8x128xf32>, vector<128x128xf32>, vector<8x128xf32> -> vector<8x128xf32>
    %c0_3 = arith.constant 0 : index
    %c0_4 = arith.constant 0 : index
    %3 = vector.load %arg3[%c0_3, %c0_4] : memref<1x128xf32, #tpu.memory_space<vmem>>, vector<1x128xf32>
    %4 = vector.broadcast %3 : vector<1x128xf32> to vector<8x128xf32>
    %5 = arith.addf %2, %4 : vector<8x128xf32>
    %cst_5 = arith.constant 0.000000e+00 : f32
    %6 = vector.broadcast %cst_5 : f32 to vector<8x128xf32>
    %7 = arith.maximumf %5, %6 : vector<8x128xf32>
    %c0_6 = arith.constant 0 : index
    %c0_7 = arith.constant 0 : index
    %8 = vector.load %arg4[%c0_6, %c0_7] : memref<128x128xf32, #tpu.memory_space<vmem>>, vector<128x128xf32>
    %cst_8 = arith.constant dense<0.000000e+00> : vector<8x128xf32>
    %9 = tpu.matmul %7, %8, %cst_8 {dimension_numbers = #tpu.dot_dimension_numbers<[1], [0], [0], [1], [0, 0, 1, 1], [], []>} : vector<8x128xf32>, vector<128x128xf32>, vector<8x128xf32> -> vector<8x128xf32>
    %c0_9 = arith.constant 0 : index
    %c0_10 = arith.constant 0 : index
    %10 = vector.load %arg5[%c0_9, %c0_10] : memref<1x128xf32, #tpu.memory_space<vmem>>, vector<1x128xf32>
    %11 = vector.broadcast %10 : vector<1x128xf32> to vector<8x128xf32>
    %12 = arith.addf %9, %11 : vector<8x128xf32>
    %c0_11 = arith.constant 0 : index
    %c0_12 = arith.constant 0 : index
    %13 = vector.load %arg6[%c0_11, %c0_12] : memref<8x128xf32, #tpu.memory_space<vmem>>, vector<8x128xf32>
    tpu.vector_store %arg6[%c0_11, %c0_12], %12 {strides = array<i32>} : memref<8x128xf32, #tpu.memory_space<vmem>>, vector<8x128xf32>,
    return
  }
  func.func @transform_0(%arg0: i32) -> (i32, i32) {
    %c0_i32 = arith.constant 0 : i32
    %c0_i32_0 = arith.constant 0 : i32
    return %arg0, %c0_i32 : i32, i32
  }
  func.func @transform_1(%arg0: i32) -> (i32, i32) {
    %c0_i32 = arith.constant 0 : i32
    %c0_i32_0 = arith.constant 0 : i32
    %c0_i32_1 = arith.constant 0 : i32
    return %c0_i32, %c0_i32_0 : i32, i32
  }
  func.func @transform_2(%arg0: i32) -> (i32, i32) {
    %c0_i32 = arith.constant 0 : i32
    %c0_i32_0 = arith.constant 0 : i32
    %c0_i32_1 = arith.constant 0 : i32
    return %c0_i32, %c0_i32_0 : i32, i32
  }
  func.func @transform_3(%arg0: i32) -> (i32, i32) {
    %c0_i32 = arith.constant 0 : i32
    %c0_i32_0 = arith.constant 0 : i32
    %c0_i32_1 = arith.constant 0 : i32
    return %c0_i32, %c0_i32_0 : i32, i32
  }
  func.func @transform_4(%arg0: i32) -> (i32, i32) {
    %c0_i32 = arith.constant 0 : i32
    %c0_i32_0 = arith.constant 0 : i32
    %c0_i32_1 = arith.constant 0 : i32
    return %c0_i32, %c0_i32_0 : i32, i32
  }
  func.func @transform_5(%arg0: i32) -> (i32, i32) {
    %c0_i32 = arith.constant 0 : i32
    %c0_i32_0 = arith.constant 0 : i32
    return %arg0, %c0_i32 : i32, i32
  }
}

</mosaic_0001>

<bundles_post_ra>
// kernel: de_forward.3
= control target key start
LH: loop header
LB: loop body
LE: loop exit
PB: predicated region body
PF: predicated region fallthrough
CT: control target
= control target key end

     0   :  { %s680_s18 = smov 0   ;;  %s852_s0 = inlined_call_operand.vmem [shape: f32[48,128], index: 0, kind: input, shape index: {}]   ;;  %s853_s1 = inlined_call_operand.vmem [shape: f32[128,128], index: 1, kind: input, shape index: {}]   ;;  %s854_s2 = inlined_call_operand.vmem [shape: f32[1,128], index: 2, kind: input, shape index: {}]   ;;  %s855_s3 = inlined_call_operand.vmem [shape: f32[128,128], index: 3, kind: input, shape index: {}]   ;;  %s856_s4 = inlined_call_operand.vmem [shape: f32[1,128], index: 4, kind: input, shape index: {}]   ;;  %s857_s5 = inlined_call_operand.vmem [shape: f32[48,128], index: 5, kind: output, shape index: {}]  }
   0x1 LB: > { %s499_s19 = sadd.s32 4294967295, %s646_s18   ;;  %p503_p0 = scmp.ge.s32.totalorder %s646_s18, 1  ;;  %s646_s18 = sphi %s680_s18, %s15_s18  }
   0x2   : > { %p188_p1 = scmp.lt.s32.totalorder %s646_s18, 3 }
   0x4   : > { %p189_p2 = pnand %p503_p0, %p188_p1 }
   0x5   : > { %s216_s21 = smul.u32 (!%p189_p2), 3, %s499_s19 }
   0x6   : > { %192 = sbr.rel (%p189_p2) target bundleno = 445 (0x1bd), region = 40 }
   0x7   : > { %p217_p3 = scmp.lt.s32.totalorder (!%p189_p2), %s216_s21, 5 }
   0xb   : > { %v246_v0 = vld [vmem:[%s853_s1 + $0x78] sm:$0xff]  ;;  %v648_v1 = vmov 0.0   ;;  %v245_v2 = vld [vmem:[%s853_s1 + $0x70] sm:$0xff]  ;;  %vm649_vm0 = vmmov 0   ;;  %v244_v3 = vld [vmem:[%s853_s1 + $0x68] sm:$0xff]  ;;  %s859_s21 = smov (!%p217_p3, %s216_s21), 5 }
   0xc   : > { %548 = vmatprep.subr.mxu0 %v648_v1  ;;  %580 = vmatprep.mubr.msk.f32.mxu0 %vm649_vm0, %v648_v1  ;;  %v243_v4 = vld [vmem:[%s853_s1 + $0x60] sm:$0xff]  ;;  %v352_v5 = vld [vmem:[%s855_s3 + $0x78] sm:$0xff]  ;;  %v351_v6 = vld [vmem:[%s855_s3 + $0x70] sm:$0xff]  ;;  %s504_s23 = sshll.u32 %s859_s21, 3 }
   0xd   : > { %549 = vmatpush3.msra.mxu0 %v246_v0  ;;  %589 = vmatprep.subr.mxu1 %v648_v1  ;;  %v242_v7 = vld [vmem:[%s853_s1 + $0x58] sm:$0xff]  ;;  %v350_v8 = vld [vmem:[%s855_s3 + $0x68] sm:$0xff]  ;;  %v241_v9 = vld [vmem:[%s853_s1 + $0x50] sm:$0xff]  ;;  %s220_s6 = scalar_lea.vmem %s852_s0, %s504_s23  ;;  %s226_s27 = scalar_lea.vmem %s857_s5, %s504_s23 }
   0xe   : > { %550 = vmatprep.subr.mxu0 %v648_v1  ;;  %621 = vmatprep.mubr.msk.f32.mxu1 %vm649_vm0, %v648_v1  ;;  %v349_v10 = vld [vmem:[%s855_s3 + $0x60] sm:$0xff]  ;;  %v240_v11 = vld [vmem:[%s853_s1 + $0x48] sm:$0xff]  ;;  %v348_v12 = vld [vmem:[%s855_s3 + $0x58] sm:$0xff] }
   0xf   : > { %551 = vmatpush3.msra.mxu0 %v245_v2  ;;  %590 = vmatpush3.msra.mxu1 %v352_v5  ;;  %v239_v13 = vld [vmem:[%s853_s1 + $0x40] sm:$0xff]  ;;  %v347_v14 = vld [vmem:[%s855_s3 + $0x50] sm:$0xff]  ;;  %v238_v15 = vld [vmem:[%s853_s1 + $0x38] sm:$0xff] }
  0x10   : > { %552 = vmatprep.subr.mxu0 %v648_v1  ;;  %591 = vmatprep.subr.mxu1 %v648_v1  ;;  %v346_v16 = vld [vmem:[%s855_s3 + $0x48] sm:$0xff]  ;;  %v237_v17 = vld [vmem:[%s853_s1 + $0x30] sm:$0xff]  ;;  %v345_v18 = vld [vmem:[%s855_s3 + $0x40] sm:$0xff] }
  0x11   : > { %553 = vmatpush3.msra.mxu0 %v244_v3  ;;  %592 = vmatpush3.msra.mxu1 %v351_v6  ;;  %v236_v19 = vld [vmem:[%s853_s1 + $0x28] sm:$0xff]  ;;  %v344_v20 = vld [vmem:[%s855_s3 + $0x38] sm:$0xff]  ;;  %v235_v21 = vld [vmem:[%s853_s1 + $0x20] sm:$0xff] }
  0x12   : > { %554 = vmatprep.subr.mxu0 %v648_v1  ;;  %593 = vmatprep.subr.mxu1 %v648_v1  ;;  %v343_v22 = vld [vmem:[%s855_s3 + $0x30] sm:$0xff]  ;;  %v234_v23 = vld [vmem:[%s853_s1 + $0x18] sm:$0xff]  ;;  %v342_v24 = vld [vmem:[%s855_s3 + $0x28] sm:$0xff] }
  0x13   : > { %555 = vmatpush3.msra.mxu0 %v243_v4  ;;  %594 = vmatpush3.msra.mxu1 %v350_v8  ;;  %v233_v25 = vld [vmem:[%s853_s1 + $0x10] sm:$0xff]  ;;  %v341_v26 = vld [vmem:[%s855_s3 + $0x20] sm:$0xff]  ;;  %v232_v27 = vld [vmem:[%s853_s1 + $0x8] sm:$0xff] }
  0x14   : > { %556 = vmatprep.subr.mxu0 %v648_v1  ;;  %595 = vmatprep.subr.mxu1 %v648_v1  ;;  %v340_v28 = vld [vmem:[%s855_s3 + $0x18] sm:$0xff]  ;;  %v231_v29 = vld [vmem:[%s853_s1] sm:$0xff]  ;;  %v229_v31 = vld [vmem:[%s220_s6 + $0x8] sm:$0xff] }
  0x15   : > { %557 = vmatpush3.msra.mxu0 %v242_v7  ;;  %596 = vmatpush3.msra.mxu1 %v349_v10  ;;  %v228_v30 = vld [vmem:[%s220_s6] sm:$0xff]  ;;  %v230_v32 = vld [vmem:[%s220_s6 + $0x10] sm:$0xff]  ;;  %v338_v34 = vld [vmem:[%s855_s3 + $0x8] sm:$0xff] }
  0x16   : > { %558 = vmatprep.subr.mxu0 %v648_v1  ;;  %597 = vmatprep.subr.mxu1 %v648_v1  ;;  %v339_v33 = vld [vmem:[%s855_s3 + $0x10] sm:$0xff]  ;;  %v337_v35 = vld [vmem:[%s855_s3] sm:$0xff] }
  0x17   : > { %559 = vmatpush3.msra.mxu0 %v241_v9  ;;  %598 = vmatpush3.msra.mxu1 %v348_v12  ;;  %v506_v36 = vld [vmem:[%s854_s2] ss:$0 sm:$0xff] }
  0x18   : > { %560 = vmatprep.subr.mxu0 %v648_v1  ;;  %599 = vmatprep.subr.mxu1 %v648_v1  ;;  %v507_v49 = vld [vmem:[%s856_s4] ss:$0 sm:$0xff] }
  0x19   : > { %561 = vmatpush3.msra.mxu0 %v240_v11  ;;  %600 = vmatpush3.msra.mxu1 %v347_v14 }
  0x1a   : > { %562 = vmatprep.subr.mxu0 %v648_v1  ;;  %601 = vmatprep.subr.mxu1 %v648_v1 }
  0x1b   : > { %563 = vmatpush3.msra.mxu0 %v239_v13  ;;  %602 = vmatpush3.msra.mxu1 %v346_v16 }
  0x1c   : > { %564 = vmatprep.subr.mxu0 %v648_v1  ;;  %603 = vmatprep.subr.mxu1 %v648_v1 }
  0x1d   : > { %565 = vmatpush3.msra.mxu0 %v238_v15  ;;  %604 = vmatpush3.msra.mxu1 %v345_v18 }
  0x1e   : > { %566 = vmatprep.subr.mxu0 %v648_v1  ;;  %605 = vmatprep.subr.mxu1 %v648_v1 }
  0x1f   : > { %567 = vmatpush3.msra.mxu0 %v237_v17  ;;  %606 = vmatpush3.msra.mxu1 %v344_v20 }
  0x20   : > { %568 = vmatprep.subr.mxu0 %v648_v1  ;;  %607 = vmatprep.subr.mxu1 %v648_v1 }
  0x21   : > { %569 = vmatpush3.msra.mxu0 %v236_v19  ;;  %608 = vmatpush3.msra.mxu1 %v343_v22 }
  0x22   : > { %570 = vmatprep.subr.mxu0 %v648_v1  ;;  %609 = vmatprep.subr.mxu1 %v648_v1 }
  0x23   : > { %571 = vmatpush3.msra.mxu0 %v235_v21  ;;  %610 = vmatpush3.msra.mxu1 %v342_v24 }
  0x24   : > { %572 = vmatprep.subr.mxu0 %v648_v1  ;;  %611 = vmatprep.subr.mxu1 %v648_v1 }
  0x25   : > { %573 = vmatpush3.msra.mxu0 %v234_v23  ;;  %612 = vmatpush3.msra.mxu1 %v341_v26 }
  0x26   : > { %574 = vmatprep.subr.mxu0 %v648_v1  ;;  %613 = vmatprep.subr.mxu1 %v648_v1 }
  0x27   : > { %575 = vmatpush3.msra.mxu0 %v233_v25  ;;  %614 = vmatpush3.msra.mxu1 %v340_v28 }
  0x28   : > { %576 = vmatprep.subr.mxu0 %v648_v1  ;;  %615 = vmatprep.subr.mxu1 %v648_v1 }
  0x29   : > { %577 = vmatpush3.msra.mxu0 %v232_v27  ;;  %616 = vmatpush3.msra.mxu1 %v339_v33 }
  0x2a   : > { %578 = vmatprep.subr.mxu0 %v648_v1  ;;  %617 = vmatprep.subr.mxu1 %v648_v1 }
  0x2b   : > { %579 = vmatpush3.msra.mxu0 %v231_v29  ;;  %618 = vmatpush3.msra.mxu1 %v338_v34 }
  0x2c   : > { %581 = vmatmul.mubr.f32.vlgmr.msra.gmra.mxu0 %v228_v30  ;;  %619 = vmatprep.subr.mxu1 %v648_v1 }
  0x2d   : > { %583 = vmatprep.mubr.msk.f32.mxu0 %vm649_vm0, %v648_v1  ;;  %620 = vmatpush3.msra.mxu1 %v337_v35 }
  0x30   : > { %584 = vmatmul.mubr.f32.gmra.mxu0 %v229_v31 }
  0x31   : > { %586 = vmatprep.mubr.msk.f32.mxu0 %vm649_vm0, %v648_v1 }
  0x34   : > { %587 = vmatmul.mubr.f32.gmra.mxu0 %v230_v32 }
  0xec   : > { %v320_v37 = vpop.f32.mrf.mxu0 }
  0xed   : > { %v321_v38 = vadd.f32 %v506_v36, %v320_v37 }
  0xee   : > { %v582_v39 = vpop.f32.mrf.mxu0 }
  0xef   : > { %v334_v40 = vmax.f32 %v321_v38, 0.0 }
  0xf0   : > { %v325_v41 = vpop.f32.mrf.mxu0 }
  0xf1   : > { %v326_v42 = vadd.f32 %v506_v36, %v325_v41  ;;  %622 = vmatmul.mubr.f32.vlgmr.msra.gmra.mxu1 %v334_v40 }
  0xf2   : > { %v585_v43 = vpop.f32.mrf.mxu0  ;;  %624 = vmatprep.mubr.msk.f32.mxu1 %vm649_vm0, %v648_v1 }
  0xf3   : > { %v335_v44 = vmax.f32 %v326_v42, 0.0 }
  0xf4   : > { %v330_v45 = vpop.f32.mrf.mxu0 }
  0xf5   : > { %v331_v46 = vadd.f32 %v506_v36, %v330_v45  ;;  %625 = vmatmul.mubr.f32.gmra.mxu1 %v335_v44 }
  0xf6   : > { %v588_v47 = vpop.f32.mrf.mxu0  ;;  %627 = vmatprep.mubr.msk.f32.mxu1 %vm649_vm0, %v648_v1 }
  0xf7   : > { %v336_v48 = vmax.f32 %v331_v46, 0.0 }
  0xf9   : > { %628 = vmatmul.mubr.f32.gmra.mxu1 %v336_v48 }
 0x1b1   : > { %v426_v50 = vpop.f32.mrf.mxu1 }
 0x1b2   : > { %v427_v51 = vadd.f32 %v507_v49, %v426_v50 }
 0x1b3   : > { %v623_v52 = vpop.f32.mrf.mxu1 }
 0x1b4   : > { %440 = vst [vmem:[%s226_s27] sm:$0xff] %v427_v51 }
 0x1b5   : > { %v431_v53 = vpop.f32.mrf.mxu1 }
 0x1b6   : > { %v432_v54 = vadd.f32 %v507_v49, %v431_v53 }
 0x1b7   : > { %v626_v55 = vpop.f32.mrf.mxu1 }
 0x1b8   : > { %441 = vst [vmem:[%s226_s27 + $0x8] sm:$0xff] %v432_v54 }
 0x1b9   : > { %v436_v56 = vpop.f32.mrf.mxu1 }
 0x1ba   : > { %v437_v57 = vadd.f32 %v507_v49, %v436_v56 }
 0x1bb   : > { %v629_v58 = vpop.f32.mrf.mxu1 }
 0x1bc   : > { %442 = vst [vmem:[%s226_s27 + $0x10] sm:$0xff] %v437_v57 }
 0x1bd PF: > { %s15_s18 = sadd.s32 1, %s646_s18  }
 0x1be   : > { %p12_p4 = scmp.ge.s32.totalorder %s15_s18, 4  }
 0x1c0   :  { %14 = sbr.rel (!%p12_p4) target bundleno = 1 (0x1), region = 70 }

// kernel: de_forward.5
= control target key start
LH: loop header
LB: loop body
LE: loop exit
PB: predicated region body
PF: predicated region fallthrough
CT: control target
= control target key end

     0   :  { %v321_v0 = vmov 0.0   ;;  %vm322_vm0 = vmmov 0   ;;  %s495_s1 = inlined_call_operand.vmem [shape: f32[128,128], index: 1, kind: input, shape index: {}]   ;;  %s496_s3 = inlined_call_operand.vmem [shape: f32[128,128], index: 3, kind: input, shape index: {}]   ;;  %s497_s0 = inlined_call_operand.vmem [shape: f32[8,128], index: 0, kind: input, shape index: {}]   ;;  %s498_s2 = inlined_call_operand.vmem [shape: f32[1,128], index: 2, kind: input, shape index: {}]   ;;  %s499_s4 = inlined_call_operand.vmem [shape: f32[1,128], index: 4, kind: input, shape index: {}]   ;;  %s500_s5 = inlined_call_operand.vmem [shape: f32[8,128], index: 5, kind: output, shape index: {}]  }
   0x1   :  { %249 = vmatprep.subr.mxu0 %v321_v0  ;;  %v36_v1 = vld [vmem:[%s495_s1 + $0x78] sm:$0xff]  ;;  %v35_v2 = vld [vmem:[%s495_s1 + $0x70] sm:$0xff]  ;;  %281 = vmatprep.mubr.msk.f32.mxu0 %vm322_vm0, %v321_v0  ;;  %v34_v3 = vld [vmem:[%s495_s1 + $0x68] sm:$0xff] }
   0x2   :  { %250 = vmatpush3.msra.mxu0 %v36_v1  ;;  %284 = vmatprep.subr.mxu1 %v321_v0  ;;  %v33_v4 = vld [vmem:[%s495_s1 + $0x60] sm:$0xff]  ;;  %v130_v5 = vld [vmem:[%s496_s3 + $0x78] sm:$0xff]  ;;  %v129_v7 = vld [vmem:[%s496_s3 + $0x70] sm:$0xff] }
   0x3   :  { %251 = vmatprep.subr.mxu0 %v321_v0  ;;  %316 = vmatprep.mubr.msk.f32.mxu1 %vm322_vm0, %v321_v0  ;;  %v32_v6 = vld [vmem:[%s495_s1 + $0x58] sm:$0xff]  ;;  %v128_v8 = vld [vmem:[%s496_s3 + $0x68] sm:$0xff]  ;;  %v31_v9 = vld [vmem:[%s495_s1 + $0x50] sm:$0xff] }
   0x4   :  { %252 = vmatpush3.msra.mxu0 %v35_v2  ;;  %285 = vmatpush3.msra.mxu1 %v130_v5  ;;  %v127_v10 = vld [vmem:[%s496_s3 + $0x60] sm:$0xff]  ;;  %v30_v11 = vld [vmem:[%s495_s1 + $0x48] sm:$0xff]  ;;  %v126_v12 = vld [vmem:[%s496_s3 + $0x58] sm:$0xff] }
   0x5   :  { %253 = vmatprep.subr.mxu0 %v321_v0  ;;  %286 = vmatprep.subr.mxu1 %v321_v0  ;;  %v29_v13 = vld [vmem:[%s495_s1 + $0x40] sm:$0xff]  ;;  %v125_v14 = vld [vmem:[%s496_s3 + $0x50] sm:$0xff]  ;;  %v28_v15 = vld [vmem:[%s495_s1 + $0x38] sm:$0xff] }
   0x6   :  { %254 = vmatpush3.msra.mxu0 %v34_v3  ;;  %287 = vmatpush3.msra.mxu1 %v129_v7  ;;  %v124_v16 = vld [vmem:[%s496_s3 + $0x48] sm:$0xff]  ;;  %v27_v17 = vld [vmem:[%s495_s1 + $0x30] sm:$0xff]  ;;  %v123_v18 = vld [vmem:[%s496_s3 + $0x40] sm:$0xff] }
   0x7   :  { %255 = vmatprep.subr.mxu0 %v321_v0  ;;  %288 = vmatprep.subr.mxu1 %v321_v0  ;;  %v26_v19 = vld [vmem:[%s495_s1 + $0x28] sm:$0xff]  ;;  %v122_v20 = vld [vmem:[%s496_s3 + $0x38] sm:$0xff]  ;;  %v25_v21 = vld [vmem:[%s495_s1 + $0x20] sm:$0xff] }
   0x8   :  { %256 = vmatpush3.msra.mxu0 %v33_v4  ;;  %289 = vmatpush3.msra.mxu1 %v128_v8  ;;  %v121_v22 = vld [vmem:[%s496_s3 + $0x30] sm:$0xff]  ;;  %v24_v23 = vld [vmem:[%s495_s1 + $0x18] sm:$0xff]  ;;  %v120_v24 = vld [vmem:[%s496_s3 + $0x28] sm:$0xff] }
   0x9   :  { %257 = vmatprep.subr.mxu0 %v321_v0  ;;  %290 = vmatprep.subr.mxu1 %v321_v0  ;;  %v23_v25 = vld [vmem:[%s495_s1 + $0x10] sm:$0xff]  ;;  %v119_v26 = vld [vmem:[%s496_s3 + $0x20] sm:$0xff]  ;;  %v22_v27 = vld [vmem:[%s495_s1 + $0x8] sm:$0xff] }
   0xa   :  { %258 = vmatpush3.msra.mxu0 %v32_v6  ;;  %291 = vmatpush3.msra.mxu1 %v127_v10  ;;  %v118_v28 = vld [vmem:[%s496_s3 + $0x18] sm:$0xff]  ;;  %v21_v29 = vld [vmem:[%s495_s1] sm:$0xff]  ;;  %v117_v31 = vld [vmem:[%s496_s3 + $0x10] sm:$0xff] }
   0xb   :  { %259 = vmatprep.subr.mxu0 %v321_v0  ;;  %292 = vmatprep.subr.mxu1 %v321_v0  ;;  %v20_v30 = vld [vmem:[%s497_s0] sm:$0xff]  ;;  %v116_v32 = vld [vmem:[%s496_s3 + $0x8] sm:$0xff] }
   0xc   :  { %260 = vmatpush3.msra.mxu0 %v31_v9  ;;  %293 = vmatpush3.msra.mxu1 %v126_v12  ;;  %v115_v33 = vld [vmem:[%s496_s3] sm:$0xff] }
   0xd   :  { %261 = vmatprep.subr.mxu0 %v321_v0  ;;  %294 = vmatprep.subr.mxu1 %v321_v0  ;;  %v213_v34 = vld [vmem:[%s498_s2] ss:$0 sm:$0xff] }
   0xe   :  { %262 = vmatpush3.msra.mxu0 %v30_v11  ;;  %295 = vmatpush3.msra.mxu1 %v125_v14  ;;  %v214_v39 = vld [vmem:[%s499_s4] ss:$0 sm:$0xff] }
   0xf   :  { %263 = vmatprep.subr.mxu0 %v321_v0  ;;  %296 = vmatprep.subr.mxu1 %v321_v0 }
  0x10   :  { %264 = vmatpush3.msra.mxu0 %v29_v13  ;;  %297 = vmatpush3.msra.mxu1 %v124_v16 }
  0x11   :  { %265 = vmatprep.subr.mxu0 %v321_v0  ;;  %298 = vmatprep.subr.mxu1 %v321_v0 }
  0x12   :  { %266 = vmatpush3.msra.mxu0 %v28_v15  ;;  %299 = vmatpush3.msra.mxu1 %v123_v18 }
  0x13   :  { %267 = vmatprep.subr.mxu0 %v321_v0  ;;  %300 = vmatprep.subr.mxu1 %v321_v0 }
  0x14   :  { %268 = vmatpush3.msra.mxu0 %v27_v17  ;;  %301 = vmatpush3.msra.mxu1 %v122_v20 }
  0x15   :  { %269 = vmatprep.subr.mxu0 %v321_v0  ;;  %302 = vmatprep.subr.mxu1 %v321_v0 }
  0x16   :  { %270 = vmatpush3.msra.mxu0 %v26_v19  ;;  %303 = vmatpush3.msra.mxu1 %v121_v22 }
  0x17   :  { %271 = vmatprep.subr.mxu0 %v321_v0  ;;  %304 = vmatprep.subr.mxu1 %v321_v0 }
  0x18   :  { %272 = vmatpush3.msra.mxu0 %v25_v21  ;;  %305 = vmatpush3.msra.mxu1 %v120_v24 }
  0x19   :  { %273 = vmatprep.subr.mxu0 %v321_v0  ;;  %306 = vmatprep.subr.mxu1 %v321_v0 }
  0x1a   :  { %274 = vmatpush3.msra.mxu0 %v24_v23  ;;  %307 = vmatpush3.msra.mxu1 %v119_v26 }
  0x1b   :  { %275 = vmatprep.subr.mxu0 %v321_v0  ;;  %308 = vmatprep.subr.mxu1 %v321_v0 }
  0x1c   :  { %276 = vmatpush3.msra.mxu0 %v23_v25  ;;  %309 = vmatpush3.msra.mxu1 %v118_v28 }
  0x1d   :  { %277 = vmatprep.subr.mxu0 %v321_v0  ;;  %310 = vmatprep.subr.mxu1 %v321_v0 }
  0x1e   :  { %278 = vmatpush3.msra.mxu0 %v22_v27  ;;  %311 = vmatpush3.msra.mxu1 %v117_v31 }
  0x1f   :  { %279 = vmatprep.subr.mxu0 %v321_v0  ;;  %312 = vmatprep.subr.mxu1 %v321_v0 }
  0x20   :  { %280 = vmatpush3.msra.mxu0 %v21_v29  ;;  %313 = vmatpush3.msra.mxu1 %v116_v32 }
  0x21   :  { %282 = vmatmul.mubr.f32.vlgmr.msra.gmra.mxu0 %v20_v30  ;;  %314 = vmatprep.subr.mxu1 %v321_v0 }
  0x22   :  { %315 = vmatpush3.msra.mxu1 %v115_v33 }
  0xe1   :  { %v110_v35 = vpop.f32.mrf.mxu0 }
  0xe2   :  { %v111_v36 = vadd.f32 %v213_v34, %v110_v35 }
  0xe3   :  { %v283_v37 = vpop.f32.mrf.mxu0 }
  0xe4   :  { %v114_v38 = vmax.f32 %v111_v36, 0.0 }
  0xe6   :  { %317 = vmatmul.mubr.f32.vlgmr.msra.gmra.mxu1 %v114_v38 }
 0x1a6   :  { %v204_v40 = vpop.f32.mrf.mxu1 }
 0x1a7   :  { %v205_v41 = vadd.f32 %v214_v39, %v204_v40 }
 0x1a8   :  { %v318_v42 = vpop.f32.mrf.mxu1 }
 0x1a9   :  { %208 = vst [vmem:[%s500_s5] sm:$0xff] %v205_v41 }

// kernel: de_forward.4
= control target key start
LH: loop header
LB: loop body
LE: loop exit
PB: predicated region body
PF: predicated region fallthrough
CT: control target
= control target key end

     0   :  { %s1434_s24 = smov 0   ;;  %s1436_s25 = smov 0   ;;  %s2266_s0 = inlined_call_operand.vmem [shape: f32[8,8,128], index: 0, kind: input, shape index: {}]   ;;  %s2267_s1 = inlined_call_operand.vmem [shape: f32[128,512], index: 1, kind: input, shape index: {}]   ;;  %s2268_s2 = inlined_call_operand.vmem [shape: f32[128,512], index: 2, kind: input, shape index: {}]   ;;  %s2269_s3 = inlined_call_operand.vmem [shape: f32[1,512], index: 3, kind: input, shape index: {}]   ;;  %s2270_s4 = inlined_call_operand.vmem [shape: f32[128,512], index: 4, kind: input, shape index: {}]   ;;  %s2271_s5 = inlined_call_operand.vmem [shape: f32[128,512], index: 5, kind: input, shape index: {}]   ;;  %s2272_s6 = inlined_call_operand.vmem [shape: f32[1,512], index: 6, kind: input, shape index: {}]   ;;  %s2273_s7 = inlined_call_operand.vmem [shape: f32[8,128], index: 7, kind: output, shape index: {}]  }
   0x1   :  { %s1438_s26 = smov 0  }
   0x2 LB: > { %s26_s27 = sadd.s32 1, %s1386_s25  ;;  %p1304_p0 = scmp.ge.s32.totalorder %s1390_s26, 1  ;;  %s1390_s26 = sphi %s1438_s26, %s17_s26   ;;  %s1386_s25 = sphi %s1436_s25, %s2275_s25   ;;  %s1382_s24 = sphi %s1434_s24, %s2274_s24  }
   0x3   : > { %p27_p1 = scmp.ge.s32.totalorder %s26_s27, 8  ;;  %p253_p2 = scmp.lt.s32.totalorder %s1390_s26, 9 }
   0x5   : > { %s2277_s27 = smov (%p27_p1, %s26_s27), 0  ;;  %p254_p3 = pnand %p1304_p0, %p253_p2 }
   0x6   : > { %p286_p4 = scmp.lt.s32.totalorder (!%p254_p3), %s1382_s24, 7  ;;  %p1306_p5 = scmp.ne.s32.totalorder (!%p254_p3), %s1382_s24, 0 }
   0x7   : > { %257 = sbr.rel (%p254_p3) target bundleno = 596 (0x254), region = 48 }
   0xc   : > { %s287_s28 = scalar_select %p286_p4, %s1382_s24, 7 }
   0xd   : > { %300 = sbr.rel (%p1306_p5) target bundleno = 21 (0x15), region = 52 }
   0xe   : > { %s1305_s29 = sshll.u32 %s287_s28, 3 }
   0xf   : > { %s1455_s9 = scalar_lea.vmem %s2266_s0, %s1305_s29 }
  0x12   : > { %v1392_v0 = vmov 0.0  }
  0x13   : > { %301 = vst [vmem:[#allocation2] sm:$0xff] %v1392_v0  ;;  %302 = vst [vmem:[#allocation3] sm:$0xff] %v1392_v0 }
  0x14   : > { %303 = vst [vmem:[#allocation4] sm:$0xff] %v1392_v0  ;;  %304 = vst [vmem:[#allocation5] sm:$0xff] %v1392_v0 }
  0x15 PF: > { %v433_v1 = vld [vmem:[%s2268_s2 + $0x1e8] sm:$0xff]  ;;  %v435_v2 = vld [vmem:[%s2268_s2 + $0x1f8] sm:$0xff]  ;;  %v432_v3 = vld [vmem:[%s2268_s2 + $0x1e0] sm:$0xff] }
  0x16   : > { %436 = vmatprep.subr.mxu0 %v433_v1  ;;  %507 = vmatprep.subr.mxu1 %v435_v2  ;;  %v434_v4 = vld [vmem:[%s2268_s2 + $0x1f0] sm:$0xff]  ;;  %v429_v5 = vld [vmem:[%s2268_s2 + $0x1c8] sm:$0xff]  ;;  %v431_v6 = vld [vmem:[%s2268_s2 + $0x1d8] sm:$0xff] }
  0x17   : > { %437 = vmatpush1.msra.mxu0 %v432_v3  ;;  %508 = vmatpush1.msra.mxu1 %v434_v4  ;;  %v428_v7 = vld [vmem:[%s2268_s2 + $0x1c0] sm:$0xff]  ;;  %v430_v8 = vld [vmem:[%s2268_s2 + $0x1d0] sm:$0xff]  ;;  %v425_v9 = vld [vmem:[%s2268_s2 + $0x1a8] sm:$0xff]  ;;  %v1393_v3 = vmov 0.0  }
  0x18   : > { %438 = vmatprep.subr.mxu0 %v429_v5  ;;  %509 = vmatprep.subr.mxu1 %v431_v6  ;;  %v427_v10 = vld [vmem:[%s2268_s2 + $0x1b8] sm:$0xff]  ;;  %v424_v11 = vld [vmem:[%s2268_s2 + $0x1a0] sm:$0xff]  ;;  %v426_v12 = vld [vmem:[%s2268_s2 + $0x1b0] sm:$0xff] }
  0x19   : > { %439 = vmatpush1.msra.mxu0 %v428_v7  ;;  %510 = vmatpush1.msra.mxu1 %v430_v8  ;;  %v421_v13 = vld [vmem:[%s2268_s2 + $0x188] sm:$0xff]  ;;  %v423_v14 = vld [vmem:[%s2268_s2 + $0x198] sm:$0xff]  ;;  %v420_v15 = vld [vmem:[%s2268_s2 + $0x180] sm:$0xff] }
  0x1a   : > { %440 = vmatprep.subr.mxu0 %v425_v9  ;;  %511 = vmatprep.subr.mxu1 %v427_v10  ;;  %v422_v16 = vld [vmem:[%s2268_s2 + $0x190] sm:$0xff]  ;;  %v417_v17 = vld [vmem:[%s2268_s2 + $0x168] sm:$0xff]  ;;  %v419_v18 = vld [vmem:[%s2268_s2 + $0x178] sm:$0xff] }
  0x1b   : > { %441 = vmatpush1.msra.mxu0 %v424_v11  ;;  %512 = vmatpush1.msra.mxu1 %v426_v12  ;;  %v416_v19 = vld [vmem:[%s2268_s2 + $0x160] sm:$0xff]  ;;  %v418_v20 = vld [vmem:[%s2268_s2 + $0x170] sm:$0xff]  ;;  %v413_v21 = vld [vmem:[%s2268_s2 + $0x148] sm:$0xff] }
  0x1c   : > { %442 = vmatprep.subr.mxu0 %v421_v13  ;;  %513 = vmatprep.subr.mxu1 %v423_v14  ;;  %v415_v22 = vld [vmem:[%s2268_s2 + $0x158] sm:$0xff]  ;;  %v412_v23 = vld [vmem:[%s2268_s2 + $0x140] sm:$0xff]  ;;  %v414_v24 = vld [vmem:[%s2268_s2 + $0x150] sm:$0xff] }
  0x1d   : > { %443 = vmatpush1.msra.mxu0 %v420_v15  ;;  %514 = vmatpush1.msra.mxu1 %v422_v16  ;;  %v409_v25 = vld [vmem:[%s2268_s2 + $0x128] sm:$0xff]  ;;  %v411_v26 = vld [vmem:[%s2268_s2 + $0x138] sm:$0xff]  ;;  %v408_v27 = vld [vmem:[%s2268_s2 + $0x120] sm:$0xff] }
  0x1e   : > { %444 = vmatprep.subr.mxu0 %v417_v17  ;;  %515 = vmatprep.subr.mxu1 %v419_v18  ;;  %v410_v28 = vld [vmem:[%s2268_s2 + $0x130] sm:$0xff]  ;;  %v405_v29 = vld [vmem:[%s2268_s2 + $0x108] sm:$0xff]  ;;  %v407_v30 = vld [vmem:[%s2268_s2 + $0x118] sm:$0xff] }
  0x1f   : > { %445 = vmatpush1.msra.mxu0 %v416_v19  ;;  %516 = vmatpush1.msra.mxu1 %v418_v20  ;;  %v404_v31 = vld [vmem:[%s2268_s2 + $0x100] sm:$0xff]  ;;  %v406_v32 = vld [vmem:[%s2268_s2 + $0x110] sm:$0xff]  ;;  %v401_v33 = vld [vmem:[%s2268_s2 + $0xe8] sm:$0xff] }
  0x20   : > { %446 = vmatprep.subr.mxu0 %v413_v21  ;;  %517 = vmatprep.subr.mxu1 %v415_v22  ;;  %v403_v34 = vld [vmem:[%s2268_s2 + $0xf8] sm:$0xff]  ;;  %v400_v35 = vld [vmem:[%s2268_s2 + $0xe0] sm:$0xff]  ;;  %v402_v36 = vld [vmem:[%s2268_s2 + $0xf0] sm:$0xff] }
  0x21   : > { %447 = vmatpush1.msra.mxu0 %v412_v23  ;;  %518 = vmatpush1.msra.mxu1 %v414_v24  ;;  %v397_v37 = vld [vmem:[%s2268_s2 + $0xc8] sm:$0xff]  ;;  %v399_v38 = vld [vmem:[%s2268_s2 + $0xd8] sm:$0xff]  ;;  %v396_v39 = vld [vmem:[%s2268_s2 + $0xc0] sm:$0xff] }
  0x22   : > { %448 = vmatprep.subr.mxu0 %v409_v25  ;;  %519 = vmatprep.subr.mxu1 %v411_v26  ;;  %v398_v40 = vld [vmem:[%s2268_s2 + $0xd0] sm:$0xff]  ;;  %v393_v41 = vld [vmem:[%s2268_s2 + $0xa8] sm:$0xff]  ;;  %v395_v42 = vld [vmem:[%s2268_s2 + $0xb8] sm:$0xff] }
  0x23   : > { %449 = vmatpush1.msra.mxu0 %v408_v27  ;;  %520 = vmatpush1.msra.mxu1 %v410_v28  ;;  %v392_v43 = vld [vmem:[%s2268_s2 + $0xa0] sm:$0xff]  ;;  %v394_v44 = vld [vmem:[%s2268_s2 + $0xb0] sm:$0xff]  ;;  %v389_v45 = vld [vmem:[%s2268_s2 + $0x88] sm:$0xff] }
  0x24   : > { %450 = vmatprep.subr.mxu0 %v405_v29  ;;  %521 = vmatprep.subr.mxu1 %v407_v30  ;;  %v391_v46 = vld [vmem:[%s2268_s2 + $0x98] sm:$0xff]  ;;  %v388_v47 = vld [vmem:[%s2268_s2 + $0x80] sm:$0xff]  ;;  %v390_v48 = vld [vmem:[%s2268_s2 + $0x90] sm:$0xff] }
  0x25   : > { %451 = vmatpush1.msra.mxu0 %v404_v31  ;;  %522 = vmatpush1.msra.mxu1 %v406_v32  ;;  %v385_v49 = vld [vmem:[%s2268_s2 + $0x68] sm:$0xff]  ;;  %v387_v50 = vld [vmem:[%s2268_s2 + $0x78] sm:$0xff]  ;;  %v384_v51 = vld [vmem:[%s2268_s2 + $0x60] sm:$0xff] }
  0x26   : > { %452 = vmatprep.subr.mxu0 %v401_v33  ;;  %523 = vmatprep.subr.mxu1 %v403_v34  ;;  %v386_v52 = vld [vmem:[%s2268_s2 + $0x70] sm:$0xff]  ;;  %v381_v53 = vld [vmem:[%s2268_s2 + $0x48] sm:$0xff]  ;;  %v383_v54 = vld [vmem:[%s2268_s2 + $0x58] sm:$0xff] }
  0x27   : > { %453 = vmatpush1.msra.mxu0 %v400_v35  ;;  %524 = vmatpush1.msra.mxu1 %v402_v36  ;;  %v380_v55 = vld [vmem:[%s2268_s2 + $0x40] sm:$0xff]  ;;  %v382_v56 = vld [vmem:[%s2268_s2 + $0x50] sm:$0xff]  ;;  %v377_v57 = vld [vmem:[%s2268_s2 + $0x28] sm:$0xff] }
  0x28   : > { %454 = vmatprep.subr.mxu0 %v397_v37  ;;  %525 = vmatprep.subr.mxu1 %v399_v38  ;;  %v379_v58 = vld [vmem:[%s2268_s2 + $0x38] sm:$0xff]  ;;  %v376_v59 = vld [vmem:[%s2268_s2 + $0x20] sm:$0xff]  ;;  %v378_v60 = vld [vmem:[%s2268_s2 + $0x30] sm:$0xff] }
  0x29   : > { %455 = vmatpush1.msra.mxu0 %v396_v39  ;;  %526 = vmatpush1.msra.mxu1 %v398_v40  ;;  %v373_v61 = vld [vmem:[%s2268_s2 + $0x8] sm:$0xff]  ;;  %v375_v62 = vld [vmem:[%s2268_s2 + $0x18] sm:$0xff]  ;;  %v372_v63 = vld [vmem:[%s2268_s2] sm:$0xff] }
  0x2a   : > { %456 = vmatprep.subr.mxu0 %v393_v41  ;;  %527 = vmatprep.subr.mxu1 %v395_v42  ;;  %v374_v0 = vld [vmem:[%s2268_s2 + $0x10] sm:$0xff]  ;;  %v306_v1 = vld [vmem:[#allocation2] sm:$0xff]  ;;  %v369_v2 = vld [vmem:[%s2267_s1 + $0x1e8] sm:$0xff] }
  0x2b   : > { %457 = vmatpush1.msra.mxu0 %v392_v43  ;;  %528 = vmatpush1.msra.mxu1 %v394_v44  ;;  %v371_v4 = vld [vmem:[%s2267_s1 + $0x1f8] sm:$0xff]  ;;  %v368_v5 = vld [vmem:[%s2267_s1 + $0x1e0] sm:$0xff]  ;;  %v370_v6 = vld [vmem:[%s2267_s1 + $0x1f0] sm:$0xff] }
  0x2c   : > { %458 = vmatprep.subr.mxu0 %v389_v45  ;;  %529 = vmatprep.subr.mxu1 %v391_v46  ;;  %v365_v7 = vld [vmem:[%s2267_s1 + $0x1c8] sm:$0xff]  ;;  %v367_v8 = vld [vmem:[%s2267_s1 + $0x1d8] sm:$0xff]  ;;  %v364_v9 = vld [vmem:[%s2267_s1 + $0x1c0] sm:$0xff] }
  0x2d   : > { %459 = vmatpush1.msra.mxu0 %v388_v47  ;;  %530 = vmatpush1.msra.mxu1 %v390_v48  ;;  %v366_v10 = vld [vmem:[%s2267_s1 + $0x1d0] sm:$0xff]  ;;  %v361_v11 = vld [vmem:[%s2267_s1 + $0x1a8] sm:$0xff]  ;;  %v363_v12 = vld [vmem:[%s2267_s1 + $0x1b8] sm:$0xff] }
  0x2e   : > { %460 = vmatprep.subr.mxu0 %v385_v49  ;;  %531 = vmatprep.subr.mxu1 %v387_v50  ;;  %v360_v13 = vld [vmem:[%s2267_s1 + $0x1a0] sm:$0xff]  ;;  %v362_v14 = vld [vmem:[%s2267_s1 + $0x1b0] sm:$0xff]  ;;  %v357_v15 = vld [vmem:[%s2267_s1 + $0x188] sm:$0xff] }
  0x2f   : > { %461 = vmatpush1.msra.mxu0 %v384_v51  ;;  %532 = vmatpush1.msra.mxu1 %v386_v52  ;;  %v359_v16 = vld [vmem:[%s2267_s1 + $0x198] sm:$0xff]  ;;  %v356_v17 = vld [vmem:[%s2267_s1 + $0x180] sm:$0xff]  ;;  %v358_v18 = vld [vmem:[%s2267_s1 + $0x190] sm:$0xff] }
  0x30   : > { %462 = vmatprep.subr.mxu0 %v381_v53  ;;  %533 = vmatprep.subr.mxu1 %v383_v54  ;;  %v353_v19 = vld [vmem:[%s2267_s1 + $0x168] sm:$0xff]  ;;  %v355_v20 = vld [vmem:[%s2267_s1 + $0x178] sm:$0xff]  ;;  %v352_v21 = vld [vmem:[%s2267_s1 + $0x160] sm:$0xff] }
  0x31   : > { %463 = vmatpush1.msra.mxu0 %v380_v55  ;;  %534 = vmatpush1.msra.mxu1 %v382_v56  ;;  %v354_v22 = vld [vmem:[%s2267_s1 + $0x170] sm:$0xff]  ;;  %v349_v23 = vld [vmem:[%s2267_s1 + $0x148] sm:$0xff]  ;;  %v351_v24 = vld [vmem:[%s2267_s1 + $0x158] sm:$0xff] }
  0x32   : > { %464 = vmatprep.subr.mxu0 %v377_v57  ;;  %535 = vmatprep.subr.mxu1 %v379_v58  ;;  %v348_v25 = vld [vmem:[%s2267_s1 + $0x140] sm:$0xff]  ;;  %v350_v26 = vld [vmem:[%s2267_s1 + $0x150] sm:$0xff]  ;;  %v345_v27 = vld [vmem:[%s2267_s1 + $0x128] sm:$0xff] }
  0x33   : > { %465 = vmatpush1.msra.mxu0 %v376_v59  ;;  %536 = vmatpush1.msra.mxu1 %v378_v60  ;;  %v347_v28 = vld [vmem:[%s2267_s1 + $0x138] sm:$0xff]  ;;  %v344_v29 = vld [vmem:[%s2267_s1 + $0x120] sm:$0xff]  ;;  %v346_v30 = vld [vmem:[%s2267_s1 + $0x130] sm:$0xff] }
  0x34   : > { %466 = vmatprep.subr.mxu0 %v373_v61  ;;  %537 = vmatprep.subr.mxu1 %v375_v62  ;;  %v341_v31 = vld [vmem:[%s2267_s1 + $0x108] sm:$0xff]  ;;  %v343_v32 = vld [vmem:[%s2267_s1 + $0x118] sm:$0xff]  ;;  %v340_v33 = vld [vmem:[%s2267_s1 + $0x100] sm:$0xff] }
  0x35   : > { %467 = vmatpush1.msra.mxu0 %v372_v63  ;;  %500 = vmatprep.mubr.f32.mxu0 %v1393_v3  ;;  %v342_v34 = vld [vmem:[%s2267_s1 + $0x110] sm:$0xff]  ;;  %v337_v35 = vld [vmem:[%s2267_s1 + $0xe8] sm:$0xff]  ;;  %v339_v36 = vld [vmem:[%s2267_s1 + $0xf8] sm:$0xff] }
  0x36   : > { %538 = vmatpush1.msra.mxu1 %v374_v0  ;;  %501 = vmatmul.mubr.f32.vlgmr.msra.gmra.mxu0 %v306_v1  ;;  %v336_v37 = vld [vmem:[%s2267_s1 + $0xe0] sm:$0xff]  ;;  %v338_v38 = vld [vmem:[%s2267_s1 + $0xf0] sm:$0xff]  ;;  %v333_v39 = vld [vmem:[%s2267_s1 + $0xc8] sm:$0xff] }
  0x37   : > { %571 = vmatprep.mubr.f32.mxu1 %v1393_v3  ;;  %578 = vmatprep.subr.mxu0 %v369_v2  ;;  %v335_v40 = vld [vmem:[%s2267_s1 + $0xd8] sm:$0xff]  ;;  %v332_v41 = vld [vmem:[%s2267_s1 + $0xc0] sm:$0xff]  ;;  %v334_v42 = vld [vmem:[%s2267_s1 + $0xd0] sm:$0xff] }
  0x38   : > { %649 = vmatprep.subr.mxu1 %v371_v4  ;;  %572 = vmatmul.mubr.f32.vlgmr.msra.gmra.mxu1 %v306_v1  ;;  %v329_v43 = vld [vmem:[%s2267_s1 + $0xa8] sm:$0xff]  ;;  %v331_v44 = vld [vmem:[%s2267_s1 + $0xb8] sm:$0xff]  ;;  %v328_v45 = vld [vmem:[%s2267_s1 + $0xa0] sm:$0xff] }
  0x39   : > { %579 = vmatpush1.msra.mxu0 %v368_v5  ;;  %650 = vmatpush1.msra.mxu1 %v370_v6  ;;  %v330_v46 = vld [vmem:[%s2267_s1 + $0xb0] sm:$0xff]  ;;  %v325_v47 = vld [vmem:[%s2267_s1 + $0x88] sm:$0xff]  ;;  %v327_v48 = vld [vmem:[%s2267_s1 + $0x98] sm:$0xff] }
  0x3a   : > { %580 = vmatprep.subr.mxu0 %v365_v7  ;;  %651 = vmatprep.subr.mxu1 %v367_v8  ;;  %v324_v49 = vld [vmem:[%s2267_s1 + $0x80] sm:$0xff]  ;;  %v326_v50 = vld [vmem:[%s2267_s1 + $0x90] sm:$0xff]  ;;  %v321_v51 = vld [vmem:[%s2267_s1 + $0x68] sm:$0xff] }
  0x3b   : > { %581 = vmatpush1.msra.mxu0 %v364_v9  ;;  %652 = vmatpush1.msra.mxu1 %v366_v10  ;;  %v323_v52 = vld [vmem:[%s2267_s1 + $0x78] sm:$0xff]  ;;  %v320_v53 = vld [vmem:[%s2267_s1 + $0x60] sm:$0xff]  ;;  %v322_v54 = vld [vmem:[%s2267_s1 + $0x70] sm:$0xff] }
  0x3c   : > { %582 = vmatprep.subr.mxu0 %v361_v11  ;;  %653 = vmatprep.subr.mxu1 %v363_v12  ;;  %v317_v55 = vld [vmem:[%s2267_s1 + $0x48] sm:$0xff]  ;;  %v319_v56 = vld [vmem:[%s2267_s1 + $0x58] sm:$0xff]  ;;  %v316_v57 = vld [vmem:[%s2267_s1 + $0x40] sm:$0xff] }
  0x3d   : > { %583 = vmatpush1.msra.mxu0 %v360_v13  ;;  %654 = vmatpush1.msra.mxu1 %v362_v14  ;;  %v318_v58 = vld [vmem:[%s2267_s1 + $0x50] sm:$0xff]  ;;  %v313_v59 = vld [vmem:[%s2267_s1 + $0x28] sm:$0xff]  ;;  %v315_v60 = vld [vmem:[%s2267_s1 + $0x38] sm:$0xff] }
  0x3e   : > { %584 = vmatprep.subr.mxu0 %v357_v15  ;;  %655 = vmatprep.subr.mxu1 %v359_v16  ;;  %v312_v61 = vld [vmem:[%s2267_s1 + $0x20] sm:$0xff]  ;;  %v314_v62 = vld [vmem:[%s2267_s1 + $0x30] sm:$0xff]  ;;  %v309_v63 = vld [vmem:[%s2267_s1 + $0x8] sm:$0xff] }
  0x3f   : > { %585 = vmatpush1.msra.mxu0 %v356_v17  ;;  %656 = vmatpush1.msra.mxu1 %v358_v18  ;;  %v311_v0 = vld [vmem:[%s2267_s1 + $0x18] sm:$0xff]  ;;  %v308_v1 = vld [vmem:[%s2267_s1] sm:$0xff]  ;;  %v310_v2 = vld [vmem:[%s2267_s1 + $0x10] sm:$0xff] }
  0x40   : > { %586 = vmatprep.subr.mxu0 %v353_v19  ;;  %657 = vmatprep.subr.mxu1 %v355_v20  ;;  %v305_v4 = vld [vmem:[%s1455_s9] sm:$0xff]  ;;  %v899_v5 = vld [vmem:[%s2271_s5 + $0x1e8] sm:$0xff]  ;;  %v901_v7 = vld [vmem:[%s2271_s5 + $0x1f8] sm:$0xff] }
  0x41   : > { %587 = vmatpush1.msra.mxu0 %v352_v21  ;;  %658 = vmatpush1.msra.mxu1 %v354_v22  ;;  %v898_v6 = vld [vmem:[%s2271_s5 + $0x1e0] sm:$0xff]  ;;  %v895_v8 = vld [vmem:[%s2271_s5 + $0x1c8] sm:$0xff]  ;;  %v900_v9 = vld [vmem:[%s2271_s5 + $0x1f0] sm:$0xff] }
  0x42   : > { %588 = vmatprep.subr.mxu0 %v349_v23  ;;  %659 = vmatprep.subr.mxu1 %v351_v24  ;;  %v894_v10 = vld [vmem:[%s2271_s5 + $0x1c0] sm:$0xff]  ;;  %v897_v11 = vld [vmem:[%s2271_s5 + $0x1d8] sm:$0xff]  ;;  %v891_v12 = vld [vmem:[%s2271_s5 + $0x1a8] sm:$0xff] }
  0x43   : > { %589 = vmatpush1.msra.mxu0 %v348_v25  ;;  %660 = vmatpush1.msra.mxu1 %v350_v26  ;;  %v896_v13 = vld [vmem:[%s2271_s5 + $0x1d0] sm:$0xff]  ;;  %v890_v14 = vld [vmem:[%s2271_s5 + $0x1a0] sm:$0xff]  ;;  %v893_v15 = vld [vmem:[%s2271_s5 + $0x1b8] sm:$0xff] }
  0x44   : > { %590 = vmatprep.subr.mxu0 %v345_v27  ;;  %661 = vmatprep.subr.mxu1 %v347_v28  ;;  %v887_v16 = vld [vmem:[%s2271_s5 + $0x188] sm:$0xff]  ;;  %v892_v17 = vld [vmem:[%s2271_s5 + $0x1b0] sm:$0xff]  ;;  %v886_v18 = vld [vmem:[%s2271_s5 + $0x180] sm:$0xff] }
  0x45   : > { %591 = vmatpush1.msra.mxu0 %v344_v29  ;;  %662 = vmatpush1.msra.mxu1 %v346_v30  ;;  %v889_v19 = vld [vmem:[%s2271_s5 + $0x198] sm:$0xff]  ;;  %v883_v20 = vld [vmem:[%s2271_s5 + $0x168] sm:$0xff]  ;;  %v888_v21 = vld [vmem:[%s2271_s5 + $0x190] sm:$0xff] }
  0x46   : > { %592 = vmatprep.subr.mxu0 %v341_v31  ;;  %663 = vmatprep.subr.mxu1 %v343_v32  ;;  %v882_v22 = vld [vmem:[%s2271_s5 + $0x160] sm:$0xff]  ;;  %v885_v23 = vld [vmem:[%s2271_s5 + $0x178] sm:$0xff]  ;;  %v879_v24 = vld [vmem:[%s2271_s5 + $0x148] sm:$0xff] }
  0x47   : > { %593 = vmatpush1.msra.mxu0 %v340_v33  ;;  %664 = vmatpush1.msra.mxu1 %v342_v34  ;;  %v884_v25 = vld [vmem:[%s2271_s5 + $0x170] sm:$0xff]  ;;  %v878_v26 = vld [vmem:[%s2271_s5 + $0x140] sm:$0xff]  ;;  %v881_v27 = vld [vmem:[%s2271_s5 + $0x158] sm:$0xff] }
  0x48   : > { %594 = vmatprep.subr.mxu0 %v337_v35  ;;  %665 = vmatprep.subr.mxu1 %v339_v36  ;;  %v875_v28 = vld [vmem:[%s2271_s5 + $0x128] sm:$0xff]  ;;  %v880_v29 = vld [vmem:[%s2271_s5 + $0x150] sm:$0xff]  ;;  %v874_v30 = vld [vmem:[%s2271_s5 + $0x120] sm:$0xff] }
  0x49   : > { %595 = vmatpush1.msra.mxu0 %v336_v37  ;;  %666 = vmatpush1.msra.mxu1 %v338_v38  ;;  %v877_v31 = vld [vmem:[%s2271_s5 + $0x138] sm:$0xff]  ;;  %v871_v32 = vld [vmem:[%s2271_s5 + $0x108] sm:$0xff]  ;;  %v876_v33 = vld [vmem:[%s2271_s5 + $0x130] sm:$0xff] }
  0x4a   : > { %596 = vmatprep.subr.mxu0 %v333_v39  ;;  %667 = vmatprep.subr.mxu1 %v335_v40  ;;  %v870_v34 = vld [vmem:[%s2271_s5 + $0x100] sm:$0xff]  ;;  %v873_v35 = vld [vmem:[%s2271_s5 + $0x118] sm:$0xff]  ;;  %v867_v36 = vld [vmem:[%s2271_s5 + $0xe8] sm:$0xff] }
  0x4b   : > { %597 = vmatpush1.msra.mxu0 %v332_v41  ;;  %668 = vmatpush1.msra.mxu1 %v334_v42  ;;  %v872_v37 = vld [vmem:[%s2271_s5 + $0x110] sm:$0xff]  ;;  %v866_v38 = vld [vmem:[%s2271_s5 + $0xe0] sm:$0xff]  ;;  %v869_v39 = vld [vmem:[%s2271_s5 + $0xf8] sm:$0xff] }
  0x4c   : > { %598 = vmatprep.subr.mxu0 %v329_v43  ;;  %669 = vmatprep.subr.mxu1 %v331_v44  ;;  %v863_v40 = vld [vmem:[%s2271_s5 + $0xc8] sm:$0xff]  ;;  %v868_v41 = vld [vmem:[%s2271_s5 + $0xf0] sm:$0xff]  ;;  %v862_v42 = vld [vmem:[%s2271_s5 + $0xc0] sm:$0xff] }
  0x4d   : > { %599 = vmatpush1.msra.mxu0 %v328_v45  ;;  %670 = vmatpush1.msra.mxu1 %v330_v46  ;;  %v865_v43 = vld [vmem:[%s2271_s5 + $0xd8] sm:$0xff]  ;;  %v859_v44 = vld [vmem:[%s2271_s5 + $0xa8] sm:$0xff]  ;;  %v864_v45 = vld [vmem:[%s2271_s5 + $0xd0] sm:$0xff] }
  0x4e   : > { %600 = vmatprep.subr.mxu0 %v325_v47  ;;  %671 = vmatprep.subr.mxu1 %v327_v48  ;;  %v858_v46 = vld [vmem:[%s2271_s5 + $0xa0] sm:$0xff]  ;;  %v861_v47 = vld [vmem:[%s2271_s5 + $0xb8] sm:$0xff]  ;;  %v855_v48 = vld [vmem:[%s2271_s5 + $0x88] sm:$0xff] }
  0x4f   : > { %601 = vmatpush1.msra.mxu0 %v324_v49  ;;  %672 = vmatpush1.msra.mxu1 %v326_v50  ;;  %v860_v49 = vld [vmem:[%s2271_s5 + $0xb0] sm:$0xff]  ;;  %v854_v50 = vld [vmem:[%s2271_s5 + $0x80] sm:$0xff] }
  0x50   : > { %602 = vmatprep.subr.mxu0 %v321_v51  ;;  %673 = vmatprep.subr.mxu1 %v323_v52  ;;  %v857_v51 = vld [vmem:[%s2271_s5 + $0x98] sm:$0xff]  ;;  %v851_v52 = vld [vmem:[%s2271_s5 + $0x68] sm:$0xff] }
  0x51   : > { %603 = vmatpush1.msra.mxu0 %v320_v53  ;;  %674 = vmatpush1.msra.mxu1 %v322_v54  ;;  %v856_v53 = vld [vmem:[%s2271_s5 + $0x90] sm:$0xff]  ;;  %v850_v54 = vld [vmem:[%s2271_s5 + $0x60] sm:$0xff] }
  0x52   : > { %604 = vmatprep.subr.mxu0 %v317_v55  ;;  %675 = vmatprep.subr.mxu1 %v319_v56  ;;  %v853_v55 = vld [vmem:[%s2271_s5 + $0x78] sm:$0xff]  ;;  %v847_v56 = vld [vmem:[%s2271_s5 + $0x48] sm:$0xff] }
  0x53   : > { %605 = vmatpush1.msra.mxu0 %v316_v57  ;;  %676 = vmatpush1.msra.mxu1 %v318_v58  ;;  %v852_v57 = vld [vmem:[%s2271_s5 + $0x70] sm:$0xff]  ;;  %v846_v58 = vld [vmem:[%s2271_s5 + $0x40] sm:$0xff] }
  0x54   : > { %606 = vmatprep.subr.mxu0 %v313_v59  ;;  %677 = vmatprep.subr.mxu1 %v315_v60  ;;  %v849_v59 = vld [vmem:[%s2271_s5 + $0x58] sm:$0xff]  ;;  %v843_v60 = vld [vmem:[%s2271_s5 + $0x28] sm:$0xff] }
  0x55   : > { %607 = vmatpush1.msra.mxu0 %v312_v61  ;;  %678 = vmatpush1.msra.mxu1 %v314_v62  ;;  %v848_v61 = vld [vmem:[%s2271_s5 + $0x50] sm:$0xff]  ;;  %v842_v62 = vld [vmem:[%s2271_s5 + $0x20] sm:$0xff] }
  0x56   : > { %608 = vmatprep.subr.mxu0 %v309_v63  ;;  %679 = vmatprep.subr.mxu1 %v311_v0  ;;  %v845_v63 = vld [vmem:[%s2271_s5 + $0x38] sm:$0xff]  ;;  %v839_v0 = vld [vmem:[%s2271_s5 + $0x8] sm:$0xff] }
  0x57   : > { %609 = vmatpush1.msra.mxu0 %v308_v1  ;;  %642 = vmatprep.mubr.f32.mxu0 %v1393_v3  ;;  %v844_v1 = vld [vmem:[%s2271_s5 + $0x30] sm:$0xff] }
  0x58   : > { %680 = vmatpush1.msra.mxu1 %v310_v2  ;;  %713 = vmatprep.mubr.f32.mxu1 %v1393_v3  ;;  %v838_v2 = vld [vmem:[%s2271_s5] sm:$0xff] }
  0x59   : > { %643 = vmatmul.mubr.f32.vlgmr.msra.gmra.mxu0 %v305_v4  ;;  %714 = vmatmul.mubr.f32.vlgmr.msra.gmra.mxu1 %v305_v4  ;;  %v841_v4 = vld [vmem:[%s2271_s5 + $0x18] sm:$0xff] }
  0x5a   : > { %966 = vmatprep.mubr.f32.mxu0 %v1393_v3  ;;  %1037 = vmatprep.mubr.f32.mxu1 %v1393_v3 }
  0x5b   : > { %902 = vmatprep.subr.mxu0 %v899_v5  ;;  %973 = vmatprep.subr.mxu1 %v901_v7  ;;  %v772_v5 = vld [vmem:[#allocation4] sm:$0xff]  ;;  %v835_v7 = vld [vmem:[%s2270_s4 + $0x1e8] sm:$0xff] }
  0x5c   : > { %903 = vmatpush1.msra.mxu0 %v898_v6  ;;  %974 = vmatpush1.msra.mxu1 %v900_v9  ;;  %v840_v6 = vld [vmem:[%s2271_s5 + $0x10] sm:$0xff]  ;;  %v834_v9 = vld [vmem:[%s2270_s4 + $0x1e0] sm:$0xff] }
  0x5d   : > { %904 = vmatprep.subr.mxu0 %v895_v8  ;;  %975 = vmatprep.subr.mxu1 %v897_v11  ;;  %v837_v8 = vld [vmem:[%s2270_s4 + $0x1f8] sm:$0xff]  ;;  %v831_v11 = vld [vmem:[%s2270_s4 + $0x1c8] sm:$0xff] }
  0x5e   : > { %905 = vmatpush1.msra.mxu0 %v894_v10  ;;  %976 = vmatpush1.msra.mxu1 %v896_v13  ;;  %v836_v10 = vld [vmem:[%s2270_s4 + $0x1f0] sm:$0xff]  ;;  %v830_v13 = vld [vmem:[%s2270_s4 + $0x1c0] sm:$0xff] }
  0x5f   : > { %906 = vmatprep.subr.mxu0 %v891_v12  ;;  %977 = vmatprep.subr.mxu1 %v893_v15  ;;  %v833_v12 = vld [vmem:[%s2270_s4 + $0x1d8] sm:$0xff]  ;;  %v827_v15 = vld [vmem:[%s2270_s4 + $0x1a8] sm:$0xff] }
  0x60   : > { %907 = vmatpush1.msra.mxu0 %v890_v14  ;;  %978 = vmatpush1.msra.mxu1 %v892_v17  ;;  %v832_v14 = vld [vmem:[%s2270_s4 + $0x1d0] sm:$0xff]  ;;  %v826_v17 = vld [vmem:[%s2270_s4 + $0x1a0] sm:$0xff] }
  0x61   : > { %908 = vmatprep.subr.mxu0 %v887_v16  ;;  %979 = vmatprep.subr.mxu1 %v889_v19  ;;  %v829_v16 = vld [vmem:[%s2270_s4 + $0x1b8] sm:$0xff]  ;;  %v823_v19 = vld [vmem:[%s2270_s4 + $0x188] sm:$0xff] }
  0x62   : > { %909 = vmatpush1.msra.mxu0 %v886_v18  ;;  %980 = vmatpush1.msra.mxu1 %v888_v21  ;;  %v828_v18 = vld [vmem:[%s2270_s4 + $0x1b0] sm:$0xff]  ;;  %v822_v21 = vld [vmem:[%s2270_s4 + $0x180] sm:$0xff] }
  0x63   : > { %910 = vmatprep.subr.mxu0 %v883_v20  ;;  %981 = vmatprep.subr.mxu1 %v885_v23  ;;  %v825_v20 = vld [vmem:[%s2270_s4 + $0x198] sm:$0xff]  ;;  %v819_v23 = vld [vmem:[%s2270_s4 + $0x168] sm:$0xff] }
  0x64   : > { %911 = vmatpush1.msra.mxu0 %v882_v22  ;;  %982 = vmatpush1.msra.mxu1 %v884_v25  ;;  %v824_v22 = vld [vmem:[%s2270_s4 + $0x190] sm:$0xff]  ;;  %v818_v25 = vld [vmem:[%s2270_s4 + $0x160] sm:$0xff] }
  0x65   : > { %912 = vmatprep.subr.mxu0 %v879_v24  ;;  %983 = vmatprep.subr.mxu1 %v881_v27  ;;  %v821_v24 = vld [vmem:[%s2270_s4 + $0x178] sm:$0xff]  ;;  %v815_v27 = vld [vmem:[%s2270_s4 + $0x148] sm:$0xff] }
  0x66   : > { %913 = vmatpush1.msra.mxu0 %v878_v26  ;;  %984 = vmatpush1.msra.mxu1 %v880_v29  ;;  %v820_v26 = vld [vmem:[%s2270_s4 + $0x170] sm:$0xff]  ;;  %v814_v29 = vld [vmem:[%s2270_s4 + $0x140] sm:$0xff] }
  0x67   : > { %914 = vmatprep.subr.mxu0 %v875_v28  ;;  %985 = vmatprep.subr.mxu1 %v877_v31  ;;  %v817_v28 = vld [vmem:[%s2270_s4 + $0x158] sm:$0xff]  ;;  %v811_v31 = vld [vmem:[%s2270_s4 + $0x128] sm:$0xff] }
  0x68   : > { %915 = vmatpush1.msra.mxu0 %v874_v30  ;;  %986 = vmatpush1.msra.mxu1 %v876_v33  ;;  %v816_v30 = vld [vmem:[%s2270_s4 + $0x150] sm:$0xff]  ;;  %v810_v33 = vld [vmem:[%s2270_s4 + $0x120] sm:$0xff] }
  0x69   : > { %916 = vmatprep.subr.mxu0 %v871_v32  ;;  %987 = vmatprep.subr.mxu1 %v873_v35  ;;  %v813_v32 = vld [vmem:[%s2270_s4 + $0x138] sm:$0xff]  ;;  %v807_v35 = vld [vmem:[%s2270_s4 + $0x108] sm:$0xff] }
  0x6a   : > { %917 = vmatpush1.msra.mxu0 %v870_v34  ;;  %988 = vmatpush1.msra.mxu1 %v872_v37  ;;  %v812_v34 = vld [vmem:[%s2270_s4 + $0x130] sm:$0xff]  ;;  %v806_v37 = vld [vmem:[%s2270_s4 + $0x100] sm:$0xff] }
  0x6b   : > { %918 = vmatprep.subr.mxu0 %v867_v36  ;;  %989 = vmatprep.subr.mxu1 %v869_v39  ;;  %v809_v36 = vld [vmem:[%s2270_s4 + $0x118] sm:$0xff]  ;;  %v803_v39 = vld [vmem:[%s2270_s4 + $0xe8] sm:$0xff] }
  0x6c   : > { %919 = vmatpush1.msra.mxu0 %v866_v38  ;;  %990 = vmatpush1.msra.mxu1 %v868_v41  ;;  %v808_v38 = vld [vmem:[%s2270_s4 + $0x110] sm:$0xff]  ;;  %v802_v41 = vld [vmem:[%s2270_s4 + $0xe0] sm:$0xff] }
  0x6d   : > { %920 = vmatprep.subr.mxu0 %v863_v40  ;;  %991 = vmatprep.subr.mxu1 %v865_v43  ;;  %v805_v40 = vld [vmem:[%s2270_s4 + $0xf8] sm:$0xff]  ;;  %v799_v43 = vld [vmem:[%s2270_s4 + $0xc8] sm:$0xff] }
  0x6e   : > { %921 = vmatpush1.msra.mxu0 %v862_v42  ;;  %992 = vmatpush1.msra.mxu1 %v864_v45  ;;  %v804_v42 = vld [vmem:[%s2270_s4 + $0xf0] sm:$0xff]  ;;  %v798_v45 = vld [vmem:[%s2270_s4 + $0xc0] sm:$0xff] }
  0x6f   : > { %922 = vmatprep.subr.mxu0 %v859_v44  ;;  %993 = vmatprep.subr.mxu1 %v861_v47  ;;  %v801_v44 = vld [vmem:[%s2270_s4 + $0xd8] sm:$0xff]  ;;  %v795_v47 = vld [vmem:[%s2270_s4 + $0xa8] sm:$0xff] }
  0x70   : > { %923 = vmatpush1.msra.mxu0 %v858_v46  ;;  %994 = vmatpush1.msra.mxu1 %v860_v49  ;;  %v800_v46 = vld [vmem:[%s2270_s4 + $0xd0] sm:$0xff]  ;;  %v794_v49 = vld [vmem:[%s2270_s4 + $0xa0] sm:$0xff] }
  0x71   : > { %924 = vmatprep.subr.mxu0 %v855_v48  ;;  %995 = vmatprep.subr.mxu1 %v857_v51  ;;  %v797_v48 = vld [vmem:[%s2270_s4 + $0xb8] sm:$0xff]  ;;  %v791_v51 = vld [vmem:[%s2270_s4 + $0x88] sm:$0xff] }
  0x72   : > { %925 = vmatpush1.msra.mxu0 %v854_v50  ;;  %996 = vmatpush1.msra.mxu1 %v856_v53  ;;  %v796_v50 = vld [vmem:[%s2270_s4 + $0xb0] sm:$0xff]  ;;  %v790_v53 = vld [vmem:[%s2270_s4 + $0x80] sm:$0xff] }
  0x73   : > { %926 = vmatprep.subr.mxu0 %v851_v52  ;;  %997 = vmatprep.subr.mxu1 %v853_v55  ;;  %v793_v52 = vld [vmem:[%s2270_s4 + $0x98] sm:$0xff]  ;;  %v787_v55 = vld [vmem:[%s2270_s4 + $0x68] sm:$0xff] }
  0x74   : > { %927 = vmatpush1.msra.mxu0 %v850_v54  ;;  %998 = vmatpush1.msra.mxu1 %v852_v57  ;;  %v792_v54 = vld [vmem:[%s2270_s4 + $0x90] sm:$0xff]  ;;  %v786_v57 = vld [vmem:[%s2270_s4 + $0x60] sm:$0xff] }
  0x75   : > { %928 = vmatprep.subr.mxu0 %v847_v56  ;;  %999 = vmatprep.subr.mxu1 %v849_v59  ;;  %v789_v56 = vld [vmem:[%s2270_s4 + $0x78] sm:$0xff]  ;;  %v783_v59 = vld [vmem:[%s2270_s4 + $0x48] sm:$0xff] }
  0x76   : > { %929 = vmatpush1.msra.mxu0 %v846_v58  ;;  %1000 = vmatpush1.msra.mxu1 %v848_v61  ;;  %v788_v58 = vld [vmem:[%s2270_s4 + $0x70] sm:$0xff]  ;;  %v782_v61 = vld [vmem:[%s2270_s4 + $0x40] sm:$0xff] }
  0x77   : > { %930 = vmatprep.subr.mxu0 %v843_v60  ;;  %1001 = vmatprep.subr.mxu1 %v845_v63  ;;  %v785_v60 = vld [vmem:[%s2270_s4 + $0x58] sm:$0xff]  ;;  %v779_v63 = vld [vmem:[%s2270_s4 + $0x28] sm:$0xff] }
  0x78   : > { %931 = vmatpush1.msra.mxu0 %v842_v62  ;;  %1002 = vmatpush1.msra.mxu1 %v844_v1  ;;  %v784_v62 = vld [vmem:[%s2270_s4 + $0x50] sm:$0xff]  ;;  %v778_v1 = vld [vmem:[%s2270_s4 + $0x20] sm:$0xff] }
  0x79   : > { %932 = vmatprep.subr.mxu0 %v839_v0  ;;  %1003 = vmatprep.subr.mxu1 %v841_v4  ;;  %v781_v0 = vld [vmem:[%s2270_s4 + $0x38] sm:$0xff]  ;;  %v775_v4 = vld [vmem:[%s2270_s4 + $0x8] sm:$0xff] }
  0x7a   : > { %933 = vmatpush1.msra.mxu0 %v838_v2  ;;  %1004 = vmatpush1.msra.mxu1 %v840_v6  ;;  %v780_v2 = vld [vmem:[%s2270_s4 + $0x30] sm:$0xff]  ;;  %v774_v6 = vld [vmem:[%s2270_s4] sm:$0xff] }
  0x7b   : > { %967 = vmatmul.mubr.f32.vlgmr.msra.gmra.mxu0 %v772_v5  ;;  %1044 = vmatprep.subr.mxu0 %v835_v7  ;;  %v776_v7 = vld [vmem:[%s2270_s4 + $0x10] sm:$0xff] }
  0x7c   : > { %1115 = vmatprep.subr.mxu1 %v837_v8  ;;  %1038 = vmatmul.mubr.f32.vlgmr.msra.gmra.mxu1 %v772_v5  ;;  %v777_v5 = vld [vmem:[%s2270_s4 + $0x18] sm:$0xff]  ;;  %v722_v8 = vlaneseq }
  0x7d   : > { %1045 = vmatpush1.msra.mxu0 %v834_v9  ;;  %1116 = vmatpush1.msra.mxu1 %v836_v10 }
  0x7e   : > { %1046 = vmatprep.subr.mxu0 %v831_v11  ;;  %1117 = vmatprep.subr.mxu1 %v833_v12  ;;  %v2234_v9 = vshrl.u32 %v722_v8, 7 }
  0x7f   : > { %1047 = vmatpush1.msra.mxu0 %v830_v13  ;;  %1118 = vmatpush1.msra.mxu1 %v832_v14  ;;  %v720_v13 = vld [vmem:[%s2269_s3] sm:$0xf] }
  0x80   : > { %1048 = vmatprep.subr.mxu0 %v827_v15  ;;  %1119 = vmatprep.subr.mxu1 %v829_v16  ;;  %v724_v12 = vsub.s32 0, %v2234_v9  ;;  %v728_v14 = vsub.s32 1, %v2234_v9 }
  0x81   : > { %1049 = vmatpush1.msra.mxu0 %v826_v17  ;;  %1120 = vmatpush1.msra.mxu1 %v828_v18 }
  0x82   : > { %1050 = vmatprep.subr.mxu0 %v823_v19  ;;  %1121 = vmatprep.subr.mxu1 %v825_v20  ;;  %v725_v17 = vrot.slane %v720_v13, %v724_v12 }
  0x83   : > { %1051 = vmatpush1.msra.mxu0 %v822_v21  ;;  %1122 = vmatpush1.msra.mxu1 %v824_v22 }
  0x84   : > { %1052 = vmatprep.subr.mxu0 %v819_v23  ;;  %1123 = vmatprep.subr.mxu1 %v821_v24  ;;  %v736_v24 = vsub.s32 3, %v2234_v9 }
  0x85   : > { %1053 = vmatpush1.msra.mxu0 %v818_v25  ;;  %1124 = vmatpush1.msra.mxu1 %v820_v26 }
  0x86   : > { %1054 = vmatprep.subr.mxu0 %v815_v27  ;;  %1125 = vmatprep.subr.mxu1 %v817_v28 }
  0x87   : > { %1055 = vmatpush1.msra.mxu0 %v814_v29  ;;  %1126 = vmatpush1.msra.mxu1 %v816_v30 }
  0x88   : > { %1056 = vmatprep.subr.mxu0 %v811_v31  ;;  %1127 = vmatprep.subr.mxu1 %v813_v32  ;;  %v737_v31 = vrot.slane %v720_v13, %v736_v24 }
  0x89   : > { %1057 = vmatpush1.msra.mxu0 %v810_v33  ;;  %1128 = vmatpush1.msra.mxu1 %v812_v34  ;;  %v732_v34 = vsub.s32 2, %v2234_v9 }
  0x8a   : > { %1058 = vmatprep.subr.mxu0 %v807_v35  ;;  %1129 = vmatprep.subr.mxu1 %v809_v36 }
  0x8b   : > { %1059 = vmatpush1.msra.mxu0 %v806_v37  ;;  %1130 = vmatpush1.msra.mxu1 %v808_v38  ;;  %v733_v37 = vrot.slane %v720_v13, %v732_v34 }
  0x8c   : > { %1060 = vmatprep.subr.mxu0 %v803_v39  ;;  %1131 = vmatprep.subr.mxu1 %v805_v40 }
  0x8d   : > { %1061 = vmatpush1.msra.mxu0 %v802_v41  ;;  %1132 = vmatpush1.msra.mxu1 %v804_v42 }
  0x8e   : > { %1062 = vmatprep.subr.mxu0 %v799_v43  ;;  %1133 = vmatprep.subr.mxu1 %v801_v44 }
  0x8f   : > { %1063 = vmatpush1.msra.mxu0 %v798_v45  ;;  %1134 = vmatpush1.msra.mxu1 %v800_v46  ;;  %v307_v46 = vld [vmem:[#allocation3] sm:$0xff] }
  0x90   : > { %1064 = vmatprep.subr.mxu0 %v795_v47  ;;  %1135 = vmatprep.subr.mxu1 %v797_v48 }
  0x91   : > { %1065 = vmatpush1.msra.mxu0 %v794_v49  ;;  %1136 = vmatpush1.msra.mxu1 %v796_v50 }
  0x92   : > { %1066 = vmatprep.subr.mxu0 %v791_v51  ;;  %1137 = vmatprep.subr.mxu1 %v793_v52 }
  0x93   : > { %1067 = vmatpush1.msra.mxu0 %v790_v53  ;;  %1138 = vmatpush1.msra.mxu1 %v792_v54 }
  0x94   : > { %1068 = vmatprep.subr.mxu0 %v787_v55  ;;  %1139 = vmatprep.subr.mxu1 %v789_v56 }
  0x95   : > { %1069 = vmatpush1.msra.mxu0 %v786_v57  ;;  %1140 = vmatpush1.msra.mxu1 %v788_v58  ;;  %v1186_v58 = vld [vmem:[%s2272_s6] sm:$0xf] }
  0x96   : > { %1070 = vmatprep.subr.mxu0 %v783_v59  ;;  %1141 = vmatprep.subr.mxu1 %v785_v60 }
  0x97   : > { %1071 = vmatpush1.msra.mxu0 %v782_v61  ;;  %1142 = vmatpush1.msra.mxu1 %v784_v62  ;;  %v1191_v61 = vrot.slane %v1186_v58, %v724_v12 }
  0x98   : > { %1072 = vmatprep.subr.mxu0 %v779_v63  ;;  %1143 = vmatprep.subr.mxu1 %v781_v0 }
  0x99   : > { %1073 = vmatpush1.msra.mxu0 %v778_v1  ;;  %1144 = vmatpush1.msra.mxu1 %v780_v2  ;;  %v1195_v1 = vrot.slane %v1186_v58, %v728_v14 }
  0x9a   : > { %1074 = vmatprep.subr.mxu0 %v775_v4  ;;  %1145 = vmatprep.subr.mxu1 %v777_v5 }
  0x9b   : > { %1075 = vmatpush1.msra.mxu0 %v774_v6  ;;  %1108 = vmatprep.mubr.f32.mxu0 %v1393_v3 }
  0x9c   : > { %1146 = vmatpush1.msra.mxu1 %v776_v7  ;;  %1179 = vmatprep.mubr.f32.mxu1 %v1393_v3  ;;  %v729_v3 = vrot.slane %v720_v13, %v728_v14 }
  0xf6   : > { %v502_v10 = vpop.f32.mrf.mxu0 }
  0xf8   : > { %v573_v11 = vpop.f32.mrf.mxu1  ;;  %v504_v15 = vpop.f32.mrf.mxu0 }
  0xfa   : > { %v575_v16 = vpop.f32.mrf.mxu1 }
 0x119   : > { %v644_v18 = vpop.f32.mrf.mxu0  ;;  %v715_v20 = vpop.f32.mrf.mxu1 }
 0x11a   : > { %v645_v19 = vadd.f32 %v644_v18, %v502_v10  ;;  %v716_v36 = vadd.f32 %v715_v20, %v573_v11 }
 0x11b   : > { %v646_v21 = vpop.f32.mrf.mxu0  ;;  %v717_v27 = vpop.f32.mrf.mxu1 }
 0x11c   : > { %v742_v22 = vadd.f32 %v725_v17, %v645_v19  ;;  %v647_v23 = vadd.f32 %v646_v21, %v504_v15  ;;  %v718_v30 = vadd.f32 %v717_v27, %v575_v16  ;;  %v744_v40 = vadd.f32 %v733_v37, %v716_v36 }
 0x11d   : > { %v1203_v15 = vrot.slane %v1186_v58, %v736_v24  ;;  %v1199_v19 = vrot.slane %v1186_v58, %v732_v34  ;;  %v773_v24 = vld [vmem:[#allocation5] sm:$0xff] }
 0x11e   : > { %v746_v25 = vsub.f32 0.0, %v742_v22  ;;  %v743_v26 = vadd.f32 %v729_v3, %v647_v23  ;;  %v745_v33 = vadd.f32 %v737_v31, %v718_v30 }
 0x120   : > { %v747_v28 = vmul.f32 1.442695, %v746_v25  ;;  %v752_v29 = vsub.f32 0.0, %v743_v26  ;;  %v759_v35 = vsub.f32 0.0, %v745_v33 }
 0x122   : > { %1336 = vpow2.f32 %v747_v28  ;;  %v753_v32 = vmul.f32 1.442695, %v752_v29  ;;  %v760_v38 = vmul.f32 1.442695, %v759_v35 }
 0x124   : > { %1338 = vpow2.f32 %v753_v32 }
 0x125   : > { %1340 = vpow2.f32 %v760_v38 }
 0x12f   : > { %v1337_v39 = vpop.eup %1336 }
 0x130   : > { %v749_v41 = vadd.f32 1.0, %v1337_v39 }
 0x131   : > { %v1339_v42 = vpop.eup %1338 }
 0x132   : > { %1342 = vrcp.f32 %v749_v41  ;;  %v755_v43 = vadd.f32 1.0, %v1339_v42  ;;  %v1341_v44 = vpop.eup %1340 }
 0x133   : > { %1344 = vtanh.f32 %v744_v40  ;;  %v762_v49 = vadd.f32 1.0, %v1341_v44 }
 0x134   : > { %1346 = vrcp.f32 %v755_v43 }
 0x135   : > { %1348 = vrcp.f32 %v762_v49 }
 0x13b   : > { %v968_v56 = vpop.f32.mrf.mxu0 }
 0x13c   : > { %v1039_v57 = vpop.f32.mrf.mxu1 }
 0x13d   : > { %v970_v59 = vpop.f32.mrf.mxu0 }
 0x13e   : > { %v1041_v60 = vpop.f32.mrf.mxu1 }
 0x13f   : > { %v1343_v45 = vpop.eup %1342 }
 0x140   : > { %v1345_v47 = vpop.eup %1344 }
 0x141   : > { %v1347_v48 = vpop.eup %1346  ;;  %v766_v50 = vmul.f32 %v1345_v47, %v1343_v45 }
 0x142   : > { %v765_v51 = vmul.f32 %v1347_v48, %v307_v46  ;;  %v1349_v53 = vpop.eup %1348 }
 0x144   : > { %v767_v52 = vadd.f32 %v766_v50, %v765_v51 }
 0x146   : > { %1350 = vtanh.f32 %v767_v52  ;;  %771 = vst [vmem:[#allocation3] sm:$0xff] %v767_v52 }
 0x153   : > { %v1351_v54 = vpop.eup %1350 }
 0x154   : > { %v769_v55 = vmul.f32 %v1351_v54, %v1349_v53 }
 0x156   : > { %770 = vst [vmem:[#allocation2] sm:$0xff] %v769_v55  ;;  %1109 = vmatmul.mubr.f32.vlgmr.msra.gmra.mxu0 %v769_v55  ;;  %1180 = vmatmul.mubr.f32.vlgmr.msra.gmra.mxu1 %v769_v55 }
 0x216   : > { %v1110_v62 = vpop.f32.mrf.mxu0  ;;  %v1181_v0 = vpop.f32.mrf.mxu1 }
 0x217   : > { %v1111_v63 = vadd.f32 %v1110_v62, %v968_v56  ;;  %v1182_v18 = vadd.f32 %v1181_v0, %v1039_v57 }
 0x218   : > { %v1112_v2 = vpop.f32.mrf.mxu0  ;;  %v1183_v8 = vpop.f32.mrf.mxu1 }
 0x219   : > { %v1208_v4 = vadd.f32 %v1191_v61, %v1111_v63  ;;  %v1113_v5 = vadd.f32 %v1112_v2, %v970_v59  ;;  %v1184_v13 = vadd.f32 %v1183_v8, %v1041_v60  ;;  %v1210_v3 = vadd.f32 %v1199_v19, %v1182_v18 }
 0x21b   : > { %v1212_v6 = vsub.f32 0.0, %v1208_v4  ;;  %v1209_v7 = vadd.f32 %v1195_v1, %v1113_v5  ;;  %v1211_v16 = vadd.f32 %v1203_v15, %v1184_v13 }
 0x21d   : > { %v1213_v10 = vmul.f32 1.442695, %v1212_v6  ;;  %v1218_v11 = vsub.f32 0.0, %v1209_v7  ;;  %v1225_v17 = vsub.f32 0.0, %v1211_v16 }
 0x21f   : > { %1352 = vpow2.f32 %v1213_v10  ;;  %v1219_v12 = vmul.f32 1.442695, %v1218_v11  ;;  %v1226_v14 = vmul.f32 1.442695, %v1225_v17 }
 0x221   : > { %1354 = vpow2.f32 %v1219_v12 }
 0x222   : > { %1356 = vpow2.f32 %v1226_v14 }
 0x22c   : > { %v1353_v20 = vpop.eup %1352 }
 0x22d   : > { %v1215_v21 = vadd.f32 1.0, %v1353_v20 }
 0x22e   : > { %v1355_v22 = vpop.eup %1354 }
 0x22f   : > { %1358 = vrcp.f32 %v1215_v21  ;;  %v1221_v23 = vadd.f32 1.0, %v1355_v22  ;;  %v1357_v25 = vpop.eup %1356 }
 0x230   : > { %1360 = vtanh.f32 %v1210_v3  ;;  %v1228_v28 = vadd.f32 1.0, %v1357_v25 }
 0x231   : > { %1362 = vrcp.f32 %v1221_v23 }
 0x232   : > { %1364 = vrcp.f32 %v1228_v28 }
 0x23c   : > { %v1359_v9 = vpop.eup %1358 }
 0x23d   : > { %v1361_v26 = vpop.eup %1360 }
 0x23e   : > { %v1363_v27 = vpop.eup %1362  ;;  %v1232_v29 = vmul.f32 %v1361_v26, %v1359_v9 }
 0x23f   : > { %v1231_v30 = vmul.f32 %v1363_v27, %v773_v24  ;;  %v1365_v32 = vpop.eup %1364 }
 0x241   : > { %v1233_v31 = vadd.f32 %v1232_v29, %v1231_v30 }
 0x243   : > { %1366 = vtanh.f32 %v1233_v31  ;;  %1237 = vst [vmem:[#allocation5] sm:$0xff] %v1233_v31 }
 0x250   : > { %v1367_v33 = vpop.eup %1366 }
 0x251   : > { %v1235_v34 = vmul.f32 %v1367_v33, %v1365_v32 }
 0x253   : > { %1236 = vst [vmem:[#allocation4] sm:$0xff] %v1235_v34  ;;  %1238 = vst [vmem:[%s2273_s7] sm:$0xff] %v1235_v34 }
 0x254 PF: > { %s17_s26 = sadd.s32 1, %s1390_s26   ;;  %s2274_s24 = smov %s1386_s25 }
 0x255   : > { %p14_p6 = scmp.ge.s32.totalorder %s17_s26, 10   ;;  %s2275_s25 = smov %s2277_s27 }
 0x257   :  { %16 = sbr.rel (!%p14_p6) target bundleno = 2 (0x2), region = 82 }

</bundles_post_ra>
